<compile_context>
chip_gen: v5e
topology: v5e:2x2
jax: 0.10.0
libtpu: 0.0.40
codegen_flags: <defaults>
</compile_context>

<pallas_src>
import functools
import math

import jax
import jax.numpy as jnp
import numpy as np
from jax.experimental import pallas as pl
from jax.experimental.pallas import tpu as pltpu


_BN_EPS = 1e-5
_SUBLANE = 8


def _round_up(x, m):
    return (x + m - 1) // m * m


# ---------------------------------------------------------------------------
# Pallas kernel
# ---------------------------------------------------------------------------

def _conv3x3_grouped(x2d, w_ref, b_ref, masks_ref, taps):
    """One 3x3 'same' conv on a (C, L) activation as 3 accumulating MXU matmuls.

    x2d:       (C, L) f32 activation (C a multiple of 8, L = n_imgs*H*W lanes).
    w_ref:     (3, Cout, 3*C) bf16 folded weights; group g = kernel row dy,
               columns ordered (dx, cin) to match the concatenated pieces.
    b_ref:     (Cout, 1) f32 folded BN bias.
    masks_ref: (9, L) f32 boundary masks implementing the zero padding
               (also zero any cross-image tap when several images share lanes).
    taps:      static tuple of (k, lane_shift) with jnp.roll shift semantics.
    """
    acc = None
    for g in range(3):                                   # dy groups, K = 3*C each
        pieces = []
        for k, shift in taps[3 * g:3 * (g + 1)]:
            # Circular lane rotation (XLU); the mask zeroes the wrapped /
            # out-of-image taps, which is exactly the zero-padding contribution.
            shifted = x2d if shift == 0 else pltpu.roll(x2d, shift, 1)
            # Cast each piece to bf16 as it is produced: halves the live im2col
            # footprint (the cast happens anyway before the MXU).
            pieces.append((shifted * masks_ref[k:k + 1, :]).astype(jnp.bfloat16))
        grp = jnp.concatenate(pieces, axis=0)            # (3*C, L) bf16
        part = jnp.dot(w_ref[g], grp,
                       preferred_element_type=jnp.float32)  # (Cout, L) f32
        acc = part if acc is None else acc + part
    y = acc + b_ref[...]                                 # folded BN bias (f32)
    return jnp.maximum(y, 0.0)                           # ReLU (f32)


def _double_conv_kernel(x_ref, masks_ref, w1_ref, b1_ref, w2_ref, b2_ref,
                        o_ref, *, taps):
    x2d = x_ref[...]                                               # (Cin_p, L) f32
    a1 = _conv3x3_grouped(x2d, w1_ref, b1_ref, masks_ref, taps)    # stays in VMEM
    a2 = _conv3x3_grouped(a1, w2_ref, b2_ref, masks_ref, taps)
    o_ref[...] = a2.astype(o_ref.dtype)
    # TODO(synk): nn.Dropout is identity in eval mode (no stochastic masking).


# ---------------------------------------------------------------------------
# Wrapper
# ---------------------------------------------------------------------------

def _conv_taps_and_masks(h, w, n_imgs):
    """Static lane shifts + boundary masks for a 3x3 'same' conv on (C, n_imgs*h*w).

    The per-image mask is tiled across images; any tap that would read outside its
    own image (including across image boundaries inside the lane block, or across
    the circular roll wrap) is zeroed, so folding images into lanes is exact.
    """
    hw = h * w
    lane_len = n_imgs * hw
    taps = []
    mask1 = np.zeros((9, hw), np.float32)
    ys, xs = np.meshgrid(np.arange(h), np.arange(w), indexing="ij")
    for k in range(9):
        dy, dx = divmod(k, 3)
        oy, ox = dy - 1, dx - 1
        # want shifted[q] = x[q + oy*w + ox]  ->  jnp.roll shift = -(oy*w+ox)
        shift = (-(oy * w + ox)) % lane_len
        taps.append((k, int(shift)))
        valid = ((ys + oy >= 0) & (ys + oy < h) &
                 (xs + ox >= 0) & (xs + ox < w))
        mask1[k] = valid.reshape(-1).astype(np.float32)
    masks = np.tile(mask1, (1, n_imgs))                  # (9, n_imgs*hw)
    return tuple(taps), jnp.asarray(masks)


def double_conv_forward(x_nchw, packed, out_channels, *, out_dtype=jnp.float32):
    """Fused DoubleConv forward.  x: (N, Cin, H, W) f32 NCHW (PyTorch layout)."""
    n, cin, h, w = x_nchw.shape
    hw = h * w
    w1, b1, w2, b2 = packed["w1"], packed["b1"], packed["w2"], packed["b2"]
    cout_pad = w1.shape[1]
    cin_pad = w1.shape[2] // 3

    # Images per lane block: target >= 512 lanes per block (wide unmasked MXU N,
    # fewer grid steps) while keeping the block lane length 128-aligned.
    nb = min(n, max(1, -(-512 // hw)))
    if (nb * hw) % 128 != 0:
        nb = n               # single block == full array, so alignment is waived
    n_pad = _round_up(n, nb)
    lane = nb * hw

    taps, masks = _conv_taps_and_masks(h, w, nb)

    # Channel/batch padding (tiny, one-time), then NCHW -> (C, N*H*W): channels on
    # sublanes, batch folded into the lane axis.
    x2d = x_nchw.astype(jnp.float32)
    if cin_pad != cin:
        x2d = jnp.pad(x2d, ((0, 0), (0, cin_pad - cin), (0, 0), (0, 0)))
    if n_pad != n:
        x2d = jnp.pad(x2d, ((0, n_pad - n), (0, 0), (0, 0), (0, 0)))
    x2d = jnp.transpose(x2d, (1, 0, 2, 3)).reshape(cin_pad, n_pad * hw)

    itemsize_out = np.dtype(out_dtype).itemsize
    w_bytes = 2 * (w1.size + w2.size) + 4 * (b1.size + b2.size)
    block_bytes = (
        2 * cin_pad * lane * 4                     # double-buffered input block
        + 2 * cout_pad * lane * itemsize_out       # double-buffered output block
        + 2 * 9 * lane * 4                         # masks (f32)
        + 2 * w_bytes                              # weights / bias
        + 3 * max(cin_pad, cout_pad) * lane * 2    # live bf16 dy-group operand
        + 3 * cout_pad * lane * 4                  # f32 acc / intermediate act
    )
    vmem_limit = int(min(max(2 * block_bytes, 16 * 2 ** 20), 64 * 2 ** 20))

    flops = 2 * 9 * n * hw * (cin_pad * cout_pad + cout_pad * cout_pad)
    bytes_accessed = int(cin_pad * n_pad * hw * 4
                         + cout_pad * n_pad * hw * itemsize_out
                         + 9 * lane * 4 + w_bytes)

    kernel = functools.partial(_double_conv_kernel, taps=taps)
    out = pl.pallas_call(
        kernel,
        out_shape=jax.ShapeDtypeStruct((cout_pad, n_pad * hw), out_dtype),
        grid=(n_pad // nb,),
        in_specs=[
            pl.BlockSpec((cin_pad, lane), lambda i: (0, i)),
            pl.BlockSpec(masks.shape, lambda i: (0, 0)),
            pl.BlockSpec(w1.shape, lambda i: (0, 0, 0)),
            pl.BlockSpec(b1.shape, lambda i: (0, 0)),
            pl.BlockSpec(w2.shape, lambda i: (0, 0, 0)),
            pl.BlockSpec(b2.shape, lambda i: (0, 0)),
        ],
        out_specs=pl.BlockSpec((cout_pad, lane), lambda i: (0, i)),
        compiler_params=pltpu.CompilerParams(
            dimension_semantics=("parallel",),   # v7x: shard image groups over 2 TCs
            vmem_limit_bytes=vmem_limit,
        ),
        cost_estimate=pl.CostEstimate(flops=flops, transcendentals=0,
                                      bytes_accessed=bytes_accessed),
    )(x2d, masks, w1, b1, w2, b2)

    # Back to NCHW; drop image/channel padding.
    y = out.reshape(cout_pad, n_pad, h, w).transpose(1, 0, 2, 3)
    return y[:n, :out_channels]


# ---------------------------------------------------------------------------
# Parameters: init, BN folding, kernel packing, pure-JAX reference
# ---------------------------------------------------------------------------

def init_double_conv_params(key, in_channels, out_channels):
    ks = jax.random.split(key, 8)

    def conv_w(k, cin, cout):
        return (jax.random.normal(k, (cout, cin, 3, 3), jnp.float32)
                / math.sqrt(9 * cin))

    def bn(kg, kb, km, cout):
        return {
            "gamma": 1.0 + 0.1 * jax.random.normal(kg, (cout,), jnp.float32),
            "beta": 0.1 * jax.random.normal(kb, (cout,), jnp.float32),
            "mean": 0.1 * jax.random.normal(km, (cout,), jnp.float32),
            "var": jnp.ones((cout,), jnp.float32),
        }

    return {
        "w1": conv_w(ks[0], in_channels, out_channels),
        "bn1": bn(ks[1], ks[2], ks[3], out_channels),
        "w2": conv_w(ks[4], out_channels, out_channels),
        "bn2": bn(ks[5], ks[6], ks[7], out_channels),
    }


def _fold_bn(w, bn):
    # Eval-mode BatchNorm folded into the (bias-free) conv: y = conv*scale + shift
    scale = bn["gamma"] * jax.lax.rsqrt(bn["var"] + _BN_EPS)      # (cout,)
    w_f = w * scale[:, None, None, None]
    b_f = bn["beta"] - bn["mean"] * scale
    return w_f, b_f


def _pack_conv(w_f, b_f, cin_pad, cout_pad):
    cout, cin = w_f.shape[0], w_f.shape[1]
    w_p = jnp.pad(w_f, ((0, cout_pad - cout), (0, cin_pad - cin), (0, 0), (0, 0)))
    # (cout_p, cin_p, ky, kx) -> (ky, cout_p, kx, cin_p) -> (3, cout_p, 3*cin_p):
    # group g = ky (= dy); column order (kx, cin) matches the kernel's
    # concatenation of the dx = 0,1,2 shifted pieces (cin_p rows each).
    w_mat = jnp.transpose(w_p, (2, 0, 3, 1)).reshape(3, cout_pad, 3 * cin_pad)
    b_col = jnp.pad(b_f, (0, cout_pad - cout)).reshape(cout_pad, 1)
    return w_mat.astype(jnp.bfloat16), b_col.astype(jnp.float32)


def pack_double_conv_params(raw):
    cout, cin = raw["w1"].shape[0], raw["w1"].shape[1]
    cin_pad = _round_up(cin, _SUBLANE)
    cout_pad = _round_up(cout, _SUBLANE)
    w1f, b1f = _fold_bn(raw["w1"], raw["bn1"])
    w2f, b2f = _fold_bn(raw["w2"], raw["bn2"])
    w1m, b1c = _pack_conv(w1f, b1f, cin_pad, cout_pad)
    w2m, b2c = _pack_conv(w2f, b2f, cout_pad, cout_pad)
    return {"w1": w1m, "b1": b1c, "w2": w2m, "b2": b2c}


def double_conv_reference(x_nchw, raw):
    """Pure-JAX (f32) reference: conv -> BN(eval) -> ReLU, twice."""
    def conv_bn_relu(x, w, bn):
        y = jax.lax.conv_general_dilated(
            x, w, window_strides=(1, 1), padding=((1, 1), (1, 1)),
            dimension_numbers=("NCHW", "OIHW", "NCHW"),
            precision=jax.lax.Precision.HIGHEST)
        scale = bn["gamma"] * jax.lax.rsqrt(bn["var"] + _BN_EPS)
        shift = bn["beta"] - bn["mean"] * scale
        y = y * scale[None, :, None, None] + shift[None, :, None, None]
        return jnp.maximum(y, 0.0)

    h = conv_bn_relu(x_nchw, raw["w1"], raw["bn1"])
    return conv_bn_relu(h, raw["w2"], raw["bn2"])


# ---------------------------------------------------------------------------
# main
# ---------------------------------------------------------------------------

if __name__ == "__main__":
    N, C_in, H, W = 2, 4, 16, 16
    C_out = 16

    key = jax.random.PRNGKey(0)
    k_x, k_p = jax.random.split(key)
    x = jax.random.normal(k_x, (N, C_in, H, W), jnp.float32)   # NCHW input

    raw = init_double_conv_params(k_p, C_in, C_out)
    packed = pack_double_conv_params(raw)

    fwd = jax.jit(lambda xs, ps: double_conv_forward(xs, ps, C_out))
    y = fwd(x, packed)
    jax.block_until_ready(y)

    assert y.shape == (N, C_out, H, W)
    assert bool(jnp.all(jnp.isfinite(y))), "non-finite output"
    assert float(jnp.min(y)) >= 0.0, "ReLU output must be non-negative"

    y_ref = double_conv_reference(x, raw)
    max_err = float(jnp.max(jnp.abs(y - y_ref)))
    assert max_err < 1e-1, f"mismatch vs f32 reference: max_err={max_err}"

    print("KERNEL_OK")
</pallas_src>

<mosaic_0001>
module attributes {stable_mosaic.version = 11 : i64} {
  func.func @_double_conv_kernel(%arg0: i32, %arg1: memref<8x512xf32, #tpu.memory_space<vmem>>, %arg2: memref<9x512xf32, #tpu.memory_space<vmem>>, %arg3: memref<3x16x24xbf16, #tpu.memory_space<vmem>>, %arg4: memref<16x1xf32, #tpu.memory_space<vmem>>, %arg5: memref<3x16x48xbf16, #tpu.memory_space<vmem>>, %arg6: memref<16x1xf32, #tpu.memory_space<vmem>>, %arg7: memref<16x512xf32, #tpu.memory_space<vmem>>) attributes {dimension_semantics = [#tpu.dimension_semantics<parallel>], iteration_bounds = array<i64: 1>, scalar_prefetch = 0 : i64, scratch_operands = 0 : i64, tpu.core_type = #tpu.core_type<tc>, window_params = [{transform_indices = @transform_0, window_bounds = array<i64: 8, 512>}, {pipeline_mode = #tpu.pipeline_mode<synchronous>, transform_indices = @transform_1, window_bounds = array<i64: 9, 512>}, {pipeline_mode = #tpu.pipeline_mode<synchronous>, transform_indices = @transform_2, window_bounds = array<i64: 3, 16, 24>}, {pipeline_mode = #tpu.pipeline_mode<synchronous>, transform_indices = @transform_3, window_bounds = array<i64: 16, 1>}, {pipeline_mode = #tpu.pipeline_mode<synchronous>, transform_indices = @transform_4, window_bounds = array<i64: 3, 16, 48>}, {pipeline_mode = #tpu.pipeline_mode<synchronous>, transform_indices = @transform_5, window_bounds = array<i64: 16, 1>}, {transform_indices = @transform_6, window_bounds = array<i64: 16, 512>}]} {
    %c0 = arith.constant 0 : index
    %c0_0 = arith.constant 0 : index
    %0 = vector.load %arg1[%c0, %c0_0] : memref<8x512xf32, #tpu.memory_space<vmem>>, vector<8x512xf32>
    %c17_i32 = arith.constant 17 : i32
    %1 = tpu.dynamic_rotate %0 by %c17_i32 dim 1 : vector<8x512xf32>, i32 -> vector<8x512xf32>
    %c0_1 = arith.constant 0 : index
    %c0_2 = arith.constant 0 : index
    %2 = vector.load %arg2[%c0_1, %c0_2] : memref<9x512xf32, #tpu.memory_space<vmem>>, vector<1x512xf32>
    %3 = vector.broadcast %2 : vector<1x512xf32> to vector<8x512xf32>
    %4 = arith.mulf %1, %3 : vector<8x512xf32>
    %5 = arith.truncf %4 : vector<8x512xf32> to vector<8x512xbf16>
    %c16_i32 = arith.constant 16 : i32
    %6 = tpu.dynamic_rotate %0 by %c16_i32 dim 1 : vector<8x512xf32>, i32 -> vector<8x512xf32>
    %c1 = arith.constant 1 : index
    %c0_3 = arith.constant 0 : index
    %7 = vector.load %arg2[%c1, %c0_3] : memref<9x512xf32, #tpu.memory_space<vmem>>, vector<1x512xf32>
    %8 = vector.broadcast %7 : vector<1x512xf32> to vector<8x512xf32>
    %9 = arith.mulf %6, %8 : vector<8x512xf32>
    %10 = arith.truncf %9 : vector<8x512xf32> to vector<8x512xbf16>
    %c15_i32 = arith.constant 15 : i32
    %11 = tpu.dynamic_rotate %0 by %c15_i32 dim 1 : vector<8x512xf32>, i32 -> vector<8x512xf32>
    %c2 = arith.constant 2 : index
    %c0_4 = arith.constant 0 : index
    %12 = vector.load %arg2[%c2, %c0_4] : memref<9x512xf32, #tpu.memory_space<vmem>>, vector<1x512xf32>
    %13 = vector.broadcast %12 : vector<1x512xf32> to vector<8x512xf32>
    %14 = arith.mulf %11, %13 : vector<8x512xf32>
    %15 = arith.truncf %14 : vector<8x512xf32> to vector<8x512xbf16>
    %16 = tpu.concatenate %5, %10, %15 in 0 : vector<8x512xbf16>, vector<8x512xbf16>, vector<8x512xbf16> -> vector<24x512xbf16>
    %c0_5 = arith.constant 0 : index
    %c0_6 = arith.constant 0 : index
    %c0_7 = arith.constant 0 : index
    %17 = vector.load %arg3[%c0_5, %c0_6, %c0_7] : memref<3x16x24xbf16, #tpu.memory_space<vmem>>, vector<1x16x24xbf16>
    %18 = vector.shape_cast %17 : vector<1x16x24xbf16> to vector<16x24xbf16>
    %cst = arith.constant dense<0.000000e+00> : vector<16x512xf32>
    %19 = tpu.matmul %18, %16, %cst {dimension_numbers = #tpu.dot_dimension_numbers<[1], [0], [0], [1], [0, 0, 1, 1], [], []>} : vector<16x24xbf16>, vector<24x512xbf16>, vector<16x512xf32> -> vector<16x512xf32>
    %c1_i32 = arith.constant 1 : i32
    %20 = tpu.dynamic_rotate %0 by %c1_i32 dim 1 : vector<8x512xf32>, i32 -> vector<8x512xf32>
    %c3 = arith.constant 3 : index
    %c0_8 = arith.constant 0 : index
    %21 = vector.load %arg2[%c3, %c0_8] : memref<9x512xf32, #tpu.memory_space<vmem>>, vector<1x512xf32>
    %22 = vector.broadcast %21 : vector<1x512xf32> to vector<8x512xf32>
    %23 = arith.mulf %20, %22 : vector<8x512xf32>
    %24 = arith.truncf %23 : vector<8x512xf32> to vector<8x512xbf16>
    %c4 = arith.constant 4 : index
    %c0_9 = arith.constant 0 : index
    %25 = vector.load %arg2[%c4, %c0_9] : memref<9x512xf32, #tpu.memory_space<vmem>>, vector<1x512xf32>
    %26 = vector.broadcast %25 : vector<1x512xf32> to vector<8x512xf32>
    %27 = arith.mulf %0, %26 : vector<8x512xf32>
    %28 = arith.truncf %27 : vector<8x512xf32> to vector<8x512xbf16>
    %c511_i32 = arith.constant 511 : i32
    %29 = tpu.dynamic_rotate %0 by %c511_i32 dim 1 : vector<8x512xf32>, i32 -> vector<8x512xf32>
    %c5 = arith.constant 5 : index
    %c0_10 = arith.constant 0 : index
    %30 = vector.load %arg2[%c5, %c0_10] : memref<9x512xf32, #tpu.memory_space<vmem>>, vector<1x512xf32>
    %31 = vector.broadcast %30 : vector<1x512xf32> to vector<8x512xf32>
    %32 = arith.mulf %29, %31 : vector<8x512xf32>
    %33 = arith.truncf %32 : vector<8x512xf32> to vector<8x512xbf16>
    %34 = tpu.concatenate %24, %28, %33 in 0 : vector<8x512xbf16>, vector<8x512xbf16>, vector<8x512xbf16> -> vector<24x512xbf16>
    %c1_11 = arith.constant 1 : index
    %c0_12 = arith.constant 0 : index
    %c0_13 = arith.constant 0 : index
    %35 = vector.load %arg3[%c1_11, %c0_12, %c0_13] : memref<3x16x24xbf16, #tpu.memory_space<vmem>>, vector<1x16x24xbf16>
    %36 = vector.shape_cast %35 : vector<1x16x24xbf16> to vector<16x24xbf16>
    %cst_14 = arith.constant dense<0.000000e+00> : vector<16x512xf32>
    %37 = tpu.matmul %36, %34, %cst_14 {dimension_numbers = #tpu.dot_dimension_numbers<[1], [0], [0], [1], [0, 0, 1, 1], [], []>} : vector<16x24xbf16>, vector<24x512xbf16>, vector<16x512xf32> -> vector<16x512xf32>
    %38 = arith.addf %19, %37 : vector<16x512xf32>
    %c497_i32 = arith.constant 497 : i32
    %39 = tpu.dynamic_rotate %0 by %c497_i32 dim 1 : vector<8x512xf32>, i32 -> vector<8x512xf32>
    %c6 = arith.constant 6 : index
    %c0_15 = arith.constant 0 : index
    %40 = vector.load %arg2[%c6, %c0_15] : memref<9x512xf32, #tpu.memory_space<vmem>>, vector<1x512xf32>
    %41 = vector.broadcast %40 : vector<1x512xf32> to vector<8x512xf32>
    %42 = arith.mulf %39, %41 : vector<8x512xf32>
    %43 = arith.truncf %42 : vector<8x512xf32> to vector<8x512xbf16>
    %c496_i32 = arith.constant 496 : i32
    %44 = tpu.dynamic_rotate %0 by %c496_i32 dim 1 : vector<8x512xf32>, i32 -> vector<8x512xf32>
    %c7 = arith.constant 7 : index
    %c0_16 = arith.constant 0 : index
    %45 = vector.load %arg2[%c7, %c0_16] : memref<9x512xf32, #tpu.memory_space<vmem>>, vector<1x512xf32>
    %46 = vector.broadcast %45 : vector<1x512xf32> to vector<8x512xf32>
    %47 = arith.mulf %44, %46 : vector<8x512xf32>
    %48 = arith.truncf %47 : vector<8x512xf32> to vector<8x512xbf16>
    %c495_i32 = arith.constant 495 : i32
    %49 = tpu.dynamic_rotate %0 by %c495_i32 dim 1 : vector<8x512xf32>, i32 -> vector<8x512xf32>
    %c8 = arith.constant 8 : index
    %c0_17 = arith.constant 0 : index
    %50 = vector.load %arg2[%c8, %c0_17] : memref<9x512xf32, #tpu.memory_space<vmem>>, vector<1x512xf32>
    %51 = vector.broadcast %50 : vector<1x512xf32> to vector<8x512xf32>
    %52 = arith.mulf %49, %51 : vector<8x512xf32>
    %53 = arith.truncf %52 : vector<8x512xf32> to vector<8x512xbf16>
    %54 = tpu.concatenate %43, %48, %53 in 0 : vector<8x512xbf16>, vector<8x512xbf16>, vector<8x512xbf16> -> vector<24x512xbf16>
    %c2_18 = arith.constant 2 : index
    %c0_19 = arith.constant 0 : index
    %c0_20 = arith.constant 0 : index
    %55 = vector.load %arg3[%c2_18, %c0_19, %c0_20] : memref<3x16x24xbf16, #tpu.memory_space<vmem>>, vector<1x16x24xbf16>
    %56 = vector.shape_cast %55 : vector<1x16x24xbf16> to vector<16x24xbf16>
    %cst_21 = arith.constant dense<0.000000e+00> : vector<16x512xf32>
    %57 = tpu.matmul %56, %54, %cst_21 {dimension_numbers = #tpu.dot_dimension_numbers<[1], [0], [0], [1], [0, 0, 1, 1], [], []>} : vector<16x24xbf16>, vector<24x512xbf16>, vector<16x512xf32> -> vector<16x512xf32>
    %58 = arith.addf %38, %57 : vector<16x512xf32>
    %c0_22 = arith.constant 0 : index
    %c0_23 = arith.constant 0 : index
    %59 = vector.load %arg4[%c0_22, %c0_23] : memref<16x1xf32, #tpu.memory_space<vmem>>, vector<16x1xf32>
    %60 = vector.broadcast %59 : vector<16x1xf32> to vector<16x512xf32>
    %61 = arith.addf %58, %60 : vector<16x512xf32>
    %cst_24 = arith.constant 0.000000e+00 : f32
    %62 = vector.broadcast %cst_24 : f32 to vector<16x512xf32>
    %63 = arith.maximumf %61, %62 : vector<16x512xf32>
    %c17_i32_25 = arith.constant 17 : i32
    %64 = tpu.dynamic_rotate %63 by %c17_i32_25 dim 1 : vector<16x512xf32>, i32 -> vector<16x512xf32>
    %c0_26 = arith.constant 0 : index
    %c0_27 = arith.constant 0 : index
    %65 = vector.load %arg2[%c0_26, %c0_27] : memref<9x512xf32, #tpu.memory_space<vmem>>, vector<1x512xf32>
    %66 = vector.broadcast %65 : vector<1x512xf32> to vector<16x512xf32>
    %67 = arith.mulf %64, %66 : vector<16x512xf32>
    %68 = arith.truncf %67 : vector<16x512xf32> to vector<16x512xbf16>
    %c16_i32_28 = arith.constant 16 : i32
    %69 = tpu.dynamic_rotate %63 by %c16_i32_28 dim 1 : vector<16x512xf32>, i32 -> vector<16x512xf32>
    %c1_29 = arith.constant 1 : index
    %c0_30 = arith.constant 0 : index
    %70 = vector.load %arg2[%c1_29, %c0_30] : memref<9x512xf32, #tpu.memory_space<vmem>>, vector<1x512xf32>
    %71 = vector.broadcast %70 : vector<1x512xf32> to vector<16x512xf32>
    %72 = arith.mulf %69, %71 : vector<16x512xf32>
    %73 = arith.truncf %72 : vector<16x512xf32> to vector<16x512xbf16>
    %c15_i32_31 = arith.constant 15 : i32
    %74 = tpu.dynamic_rotate %63 by %c15_i32_31 dim 1 : vector<16x512xf32>, i32 -> vector<16x512xf32>
    %c2_32 = arith.constant 2 : index
    %c0_33 = arith.constant 0 : index
    %75 = vector.load %arg2[%c2_32, %c0_33] : memref<9x512xf32, #tpu.memory_space<vmem>>, vector<1x512xf32>
    %76 = vector.broadcast %75 : vector<1x512xf32> to vector<16x512xf32>
    %77 = arith.mulf %74, %76 : vector<16x512xf32>
    %78 = arith.truncf %77 : vector<16x512xf32> to vector<16x512xbf16>
    %79 = tpu.concatenate %68, %73, %78 in 0 : vector<16x512xbf16>, vector<16x512xbf16>, vector<16x512xbf16> -> vector<48x512xbf16>
    %c0_34 = arith.constant 0 : index
    %c0_35 = arith.constant 0 : index
    %c0_36 = arith.constant 0 : index
    %80 = vector.load %arg5[%c0_34, %c0_35, %c0_36] : memref<3x16x48xbf16, #tpu.memory_space<vmem>>, vector<1x16x48xbf16>
    %81 = vector.shape_cast %80 : vector<1x16x48xbf16> to vector<16x48xbf16>
    %cst_37 = arith.constant dense<0.000000e+00> : vector<16x512xf32>
    %82 = tpu.matmul %81, %79, %cst_37 {dimension_numbers = #tpu.dot_dimension_numbers<[1], [0], [0], [1], [0, 0, 1, 1], [], []>} : vector<16x48xbf16>, vector<48x512xbf16>, vector<16x512xf32> -> vector<16x512xf32>
    %c1_i32_38 = arith.constant 1 : i32
    %83 = tpu.dynamic_rotate %63 by %c1_i32_38 dim 1 : vector<16x512xf32>, i32 -> vector<16x512xf32>
    %c3_39 = arith.constant 3 : index
    %c0_40 = arith.constant 0 : index
    %84 = vector.load %arg2[%c3_39, %c0_40] : memref<9x512xf32, #tpu.memory_space<vmem>>, vector<1x512xf32>
    %85 = vector.broadcast %84 : vector<1x512xf32> to vector<16x512xf32>
    %86 = arith.mulf %83, %85 : vector<16x512xf32>
    %87 = arith.truncf %86 : vector<16x512xf32> to vector<16x512xbf16>
    %c4_41 = arith.constant 4 : index
    %c0_42 = arith.constant 0 : index
    %88 = vector.load %arg2[%c4_41, %c0_42] : memref<9x512xf32, #tpu.memory_space<vmem>>, vector<1x512xf32>
    %89 = vector.broadcast %88 : vector<1x512xf32> to vector<16x512xf32>
    %90 = arith.mulf %63, %89 : vector<16x512xf32>
    %91 = arith.truncf %90 : vector<16x512xf32> to vector<16x512xbf16>
    %c511_i32_43 = arith.constant 511 : i32
    %92 = tpu.dynamic_rotate %63 by %c511_i32_43 dim 1 : vector<16x512xf32>, i32 -> vector<16x512xf32>
    %c5_44 = arith.constant 5 : index
    %c0_45 = arith.constant 0 : index
    %93 = vector.load %arg2[%c5_44, %c0_45] : memref<9x512xf32, #tpu.memory_space<vmem>>, vector<1x512xf32>
    %94 = vector.broadcast %93 : vector<1x512xf32> to vector<16x512xf32>
    %95 = arith.mulf %92, %94 : vector<16x512xf32>
    %96 = arith.truncf %95 : vector<16x512xf32> to vector<16x512xbf16>
    %97 = tpu.concatenate %87, %91, %96 in 0 : vector<16x512xbf16>, vector<16x512xbf16>, vector<16x512xbf16> -> vector<48x512xbf16>
    %c1_46 = arith.constant 1 : index
    %c0_47 = arith.constant 0 : index
    %c0_48 = arith.constant 0 : index
    %98 = vector.load %arg5[%c1_46, %c0_47, %c0_48] : memref<3x16x48xbf16, #tpu.memory_space<vmem>>, vector<1x16x48xbf16>
    %99 = vector.shape_cast %98 : vector<1x16x48xbf16> to vector<16x48xbf16>
    %cst_49 = arith.constant dense<0.000000e+00> : vector<16x512xf32>
    %100 = tpu.matmul %99, %97, %cst_49 {dimension_numbers = #tpu.dot_dimension_numbers<[1], [0], [0], [1], [0, 0, 1, 1], [], []>} : vector<16x48xbf16>, vector<48x512xbf16>, vector<16x512xf32> -> vector<16x512xf32>
    %101 = arith.addf %82, %100 : vector<16x512xf32>
    %c497_i32_50 = arith.constant 497 : i32
    %102 = tpu.dynamic_rotate %63 by %c497_i32_50 dim 1 : vector<16x512xf32>, i32 -> vector<16x512xf32>
    %c6_51 = arith.constant 6 : index
    %c0_52 = arith.constant 0 : index
    %103 = vector.load %arg2[%c6_51, %c0_52] : memref<9x512xf32, #tpu.memory_space<vmem>>, vector<1x512xf32>
    %104 = vector.broadcast %103 : vector<1x512xf32> to vector<16x512xf32>
    %105 = arith.mulf %102, %104 : vector<16x512xf32>
    %106 = arith.truncf %105 : vector<16x512xf32> to vector<16x512xbf16>
    %c496_i32_53 = arith.constant 496 : i32
    %107 = tpu.dynamic_rotate %63 by %c496_i32_53 dim 1 : vector<16x512xf32>, i32 -> vector<16x512xf32>
    %c7_54 = arith.constant 7 : index
    %c0_55 = arith.constant 0 : index
    %108 = vector.load %arg2[%c7_54, %c0_55] : memref<9x512xf32, #tpu.memory_space<vmem>>, vector<1x512xf32>
    %109 = vector.broadcast %108 : vector<1x512xf32> to vector<16x512xf32>
    %110 = arith.mulf %107, %109 : vector<16x512xf32>
    %111 = arith.truncf %110 : vector<16x512xf32> to vector<16x512xbf16>
    %c495_i32_56 = arith.constant 495 : i32
    %112 = tpu.dynamic_rotate %63 by %c495_i32_56 dim 1 : vector<16x512xf32>, i32 -> vector<16x512xf32>
    %c8_57 = arith.constant 8 : index
    %c0_58 = arith.constant 0 : index
    %113 = vector.load %arg2[%c8_57, %c0_58] : memref<9x512xf32, #tpu.memory_space<vmem>>, vector<1x512xf32>
    %114 = vector.broadcast %113 : vector<1x512xf32> to vector<16x512xf32>
    %115 = arith.mulf %112, %114 : vector<16x512xf32>
    %116 = arith.truncf %115 : vector<16x512xf32> to vector<16x512xbf16>
    %117 = tpu.concatenate %106, %111, %116 in 0 : vector<16x512xbf16>, vector<16x512xbf16>, vector<16x512xbf16> -> vector<48x512xbf16>
    %c2_59 = arith.constant 2 : index
    %c0_60 = arith.constant 0 : index
    %c0_61 = arith.constant 0 : index
    %118 = vector.load %arg5[%c2_59, %c0_60, %c0_61] : memref<3x16x48xbf16, #tpu.memory_space<vmem>>, vector<1x16x48xbf16>
    %119 = vector.shape_cast %118 : vector<1x16x48xbf16> to vector<16x48xbf16>
    %cst_62 = arith.constant dense<0.000000e+00> : vector<16x512xf32>
    %120 = tpu.matmul %119, %117, %cst_62 {dimension_numbers = #tpu.dot_dimension_numbers<[1], [0], [0], [1], [0, 0, 1, 1], [], []>} : vector<16x48xbf16>, vector<48x512xbf16>, vector<16x512xf32> -> vector<16x512xf32>
    %121 = arith.addf %101, %120 : vector<16x512xf32>
    %c0_63 = arith.constant 0 : index
    %c0_64 = arith.constant 0 : index
    %122 = vector.load %arg6[%c0_63, %c0_64] : memref<16x1xf32, #tpu.memory_space<vmem>>, vector<16x1xf32>
    %123 = vector.broadcast %122 : vector<16x1xf32> to vector<16x512xf32>
    %124 = arith.addf %121, %123 : vector<16x512xf32>
    %cst_65 = arith.constant 0.000000e+00 : f32
    %125 = vector.broadcast %cst_65 : f32 to vector<16x512xf32>
    %126 = arith.maximumf %124, %125 : vector<16x512xf32>
    %c0_66 = arith.constant 0 : index
    %c0_67 = arith.constant 0 : index
    %127 = vector.load %arg7[%c0_66, %c0_67] : memref<16x512xf32, #tpu.memory_space<vmem>>, vector<16x512xf32>
    tpu.vector_store %arg7[%c0_66, %c0_67], %126 {strides = array<i32>} : memref<16x512xf32, #tpu.memory_space<vmem>>, vector<16x512xf32>,
    return
  }
  func.func @transform_0(%arg0: i32) -> (i32, i32) {
    %c0_i32 = arith.constant 0 : i32
    %c0_i32_0 = arith.constant 0 : i32
    return %c0_i32, %arg0 : i32, i32
  }
  func.func @transform_1(%arg0: i32) -> (i32, i32) {
    %c0_i32 = arith.constant 0 : i32
    %c0_i32_0 = arith.constant 0 : i32
    %c0_i32_1 = arith.constant 0 : i32
    return %c0_i32, %c0_i32_0 : i32, i32
  }
  func.func @transform_2(%arg0: i32) -> (i32, i32, i32) {
    %c0_i32 = arith.constant 0 : i32
    %c0_i32_0 = arith.constant 0 : i32
    %c0_i32_1 = arith.constant 0 : i32
    %c0_i32_2 = arith.constant 0 : i32
    return %c0_i32, %c0_i32_0, %c0_i32_1 : i32, i32, i32
  }
  func.func @transform_3(%arg0: i32) -> (i32, i32) {
    %c0_i32 = arith.constant 0 : i32
    %c0_i32_0 = arith.constant 0 : i32
    %c0_i32_1 = arith.constant 0 : i32
    return %c0_i32, %c0_i32_0 : i32, i32
  }
  func.func @transform_4(%arg0: i32) -> (i32, i32, i32) {
    %c0_i32 = arith.constant 0 : i32
    %c0_i32_0 = arith.constant 0 : i32
    %c0_i32_1 = arith.constant 0 : i32
    %c0_i32_2 = arith.constant 0 : i32
    return %c0_i32, %c0_i32_0, %c0_i32_1 : i32, i32, i32
  }
  func.func @transform_5(%arg0: i32) -> (i32, i32) {
    %c0_i32 = arith.constant 0 : i32
    %c0_i32_0 = arith.constant 0 : i32
    %c0_i32_1 = arith.constant 0 : i32
    return %c0_i32, %c0_i32_0 : i32, i32
  }
  func.func @transform_6(%arg0: i32) -> (i32, i32) {
    %c0_i32 = arith.constant 0 : i32
    %c0_i32_0 = arith.constant 0 : i32
    return %c0_i32, %arg0 : i32, i32
  }
}

</mosaic_0001>

<bundles_post_ra>
// kernel: _lambda_.1
= control target key start
LH: loop header
LB: loop body
LE: loop exit
PB: predicated region body
PF: predicated region fallthrough
CT: control target
= control target key end

     0   :  { %s1509_s27 = smov 127   ;;  %s1510_s28 = smov 1   ;;  %v36_v7 = vlaneseq  ;;  %vm149_vm3 = vcmask 1043456   ;;  %vm299_vm4 = vcmask 195584   ;;  %vm1020_vm10 = vcmask 392192   ;;  %s2505_s0 = inlined_call_operand.vmem [shape: f32[8,512], index: 0, kind: input, shape index: {}]   ;;  %s2506_s1 = inlined_call_operand.vmem [shape: f32[9,512], index: 1, kind: input, shape index: {}]   ;;  %s2507_s2 = inlined_call_operand.vmem [shape: bf16[3,16,24], index: 2, kind: input, shape index: {}]   ;;  %s2508_s3 = inlined_call_operand.vmem [shape: f32[16,1], index: 3, kind: input, shape index: {}]   ;;  %s2509_s5 = inlined_call_operand.vmem [shape: f32[16,1], index: 5, kind: input, shape index: {}]   ;;  %s2510_s4 = inlined_call_operand.vmem [shape: bf16[3,16,48], index: 4, kind: input, shape index: {}]   ;;  %s2511_s6 = inlined_call_operand.vmem [shape: f32[16,512], index: 6, kind: output, shape index: {}]  }
   0x1   :  { %v27_v0 = vld [vmem:[%s2505_s0 + $0x18] sm:$0xff]  ;;  %v26_v1 = vld [vmem:[%s2505_s0 + $0x10] sm:$0xff]  ;;  %v1562_v2 = vld [vmem:[%s2505_s0] sm:$0xff]  ;;  %s1511_s7 = smov 15   ;;  %s1512_s8 = smov 17  }
   0x2   :  { %221 = vrot.lane.b32.xlu1 %v27_v0, %s1509_s27  ;;  %172 = vrot.lane.b32.xlu2 %v26_v1, %s1510_s28  ;;  %v1571_v3 = vld [vmem:[%s2505_s0 + $0x8] sm:$0xff]  ;;  %s1513_s0 = smov 16   ;;  %s1514_s9 = smov 111   ;;  %v1628_v13 = vand.u32 127, %v36_v7 }
   0x3   :  { %215 = vrot.lane.b32.xlu0 %v1562_v2, %s1509_s27  ;;  %s1515_s10 = smov 113   ;;  %s1516_s11 = smov 112   ;;  %v1430_v8 = vld [vmem:[%s2506_s1 + $0x4] ss:$8 sm:$0xf] }
   0x4   :  { %v1624_v11 = vperm.slane %v1430_v8, 2  ;;  %v1626_v12 = vperm.slane %v1430_v8, 3  ;;  %v1429_v15 = vld [vmem:[%s2506_s1 + $0x3] ss:$8 sm:$0xf]  ;;  %vm176_vm0 = vcmp.lt.s32.totalorder %v1628_v13, 1 }
   0x5   :  { %v1431_v16 = vld [vmem:[%s2506_s1 + $0x5] ss:$8 sm:$0xf]  ;;  %vm223_vm1 = vcmp.lt.s32.totalorder %v1628_v13, 127  ;;  %v1640_v19 = vperm.slane %v1429_v15, 3  ;;  %v1642_v20 = vperm.slane %v1429_v15, 2 }
   0x6   :  { %2538 = vst [vmem:[#allocation2_spill] sm:$0xff] %v1624_v11  ;;  %v211_v17 = vmul.f32 %v1624_v11, %v26_v1  ;;  %v212_v18 = vmul.f32 %v1626_v12, %v27_v0  ;;  %v1646_v22 = vperm.slane %v1431_v16, 3  ;;  %v1648_v23 = vperm.slane %v1431_v16, 2  ;;  %v1428_v59 = vld [vmem:[%s2506_s1 + $0x2] ss:$8 sm:$0xf] }
   0x7   :  { %2539 = vst [vmem:[#allocation3_spill] sm:$0xff] %v1626_v12  ;;  %v1654_v28 = vperm.slane %v1430_v8, 0  ;;  %v1656_v29 = vperm.slane %v1430_v8, 1  ;;  %vm97_vm2 = vcmp.lt.s32.totalorder %v1628_v13, 15  ;;  %v1671_v42 = vperm.slane %v1429_v15, 0 }
   0x8   :  { %v214_v27 = vpack.c.bf16 %v212_v18, %v211_v17  ;;  %v1673_v43 = vperm.slane %v1429_v15, 1  ;;  %v1675_v45 = vperm.slane %v1431_v16, 0  ;;  %v1677_v46 = vperm.slane %v1431_v16, 1 }
   0x9   :  { %v209_v39 = vmul.f32 %v1654_v28, %v1562_v2  ;;  %v210_v40 = vmul.f32 %v1656_v29, %v1571_v3  ;;  %v1697_v7 = vperm.slane %v1428_v59, 1  ;;  %vm38_vm5 = vcmp.lt.s32.totalorder %v1628_v13, 17 }
   0xa   :  { %174 = vrot.lane.b32.xlu2 %v27_v0, %s1510_s28  ;;  %170 = vrot.lane.b32.xlu1 %v1571_v3, %s1510_s28  ;;  %v259_v38 = vunpack.c.l.b16 %v214_v27  ;;  %v260_v52 = vunpack.c.h.b16 %v214_v27  ;;  %vm67_vm6 = vcmp.lt.s32.totalorder %v1628_v13, 16  ;;  %vm515_vm7 = vcmp.lt.s32.totalorder %v1628_v13, 111 }
   0xb   :  { %219 = vrot.lane.b32.xlu0 %v26_v1, %s1509_s27  ;;  %v1679_v53 = vpack.c.bf16 %v210_v40, %v209_v39  ;;  %v1492_v40 = vld [vmem:[%s2507_s2 + $0x8] sm:$0xff]  ;;  %vm455_vm8 = vcmp.lt.s32.totalorder %v1628_v13, 113  ;;  %vm485_vm9 = vcmp.lt.s32.totalorder %v1628_v13, 112 }
   0xc   :  { %v263_v51 = vpack.c.b16 %v259_v38, %v259_v38  ;;  %v264_v15 = vpack.c.b16 %v260_v52, %v260_v52 }
   0xd   :  { %v257_v18 = vunpack.c.l.b16 %v1679_v53  ;;  %v258_v27 = vunpack.c.h.b16 %v1679_v53 }
  0x12   :  { %91 = vrot.lane.b32.xlu2 %v1571_v3, %s1511_s7  ;;  %168 = vrot.lane.b32.xlu1 %v1562_v2, %s1510_s28 }
  0x13   :  { %217 = vrot.lane.b32.xlu0 %v1571_v3, %s1509_s27 }
  0x1a   :  { %30 = vrot.lane.b32.xlu2 %v1571_v3, %s1512_s8  ;;  %95 = vrot.lane.b32.xlu1 %v27_v0, %s1511_s7 }
  0x1b   :  { %93 = vrot.lane.b32.xlu0 %v26_v1, %s1511_s7 }
  0x22   :  { %61 = vrot.lane.b32.xlu2 %v1571_v3, %s1513_s0  ;;  %34 = vrot.lane.b32.xlu1 %v27_v0, %s1512_s8 }
  0x23   :  { %32 = vrot.lane.b32.xlu0 %v26_v1, %s1512_s8 }
  0x2a   :  { %89 = vrot.lane.b32.xlu2 %v1562_v2, %s1511_s7  ;;  %65 = vrot.lane.b32.xlu1 %v27_v0, %s1513_s0 }
  0x2b   :  { %63 = vrot.lane.b32.xlu0 %v26_v1, %s1513_s0 }
  0x32   :  { %507 = vrot.lane.b32.xlu2 %v1562_v2, %s1514_s9  ;;  %59 = vrot.lane.b32.xlu1 %v1562_v2, %s1513_s0 }
  0x33   :  { %28 = vrot.lane.b32.xlu0 %v1562_v2, %s1512_s8 }
  0x3a   :  { %447 = vrot.lane.b32.xlu2 %v1562_v2, %s1515_s10  ;;  %513 = vrot.lane.b32.xlu1 %v27_v0, %s1514_s9 }
  0x3b   :  { %511 = vrot.lane.b32.xlu0 %v26_v1, %s1514_s9 }
  0x42   :  { %477 = vrot.lane.b32.xlu2 %v1562_v2, %s1516_s11  ;;  %453 = vrot.lane.b32.xlu1 %v27_v0, %s1515_s10 }
  0x43   :  { %451 = vrot.lane.b32.xlu0 %v26_v1, %s1515_s10 }
  0x4a   :  { %509 = vrot.lane.b32.xlu2 %v1571_v3, %s1514_s9  ;;  %483 = vrot.lane.b32.xlu1 %v27_v0, %s1516_s11 }
  0x4b   :  { %481 = vrot.lane.b32.xlu0 %v26_v1, %s1516_s11 }
  0x52   :  { %479 = vrot.lane.b32.xlu1 %v1571_v3, %s1516_s11 }
  0x53   :  { %449 = vrot.lane.b32.xlu0 %v1571_v3, %s1515_s10 }
  0x5c   :  { %v173_v4 = vpop.permute.xlu2 %172 }
  0x64   :  { %v175_v5 = vpop.permute.xlu2 %174 }
  0x65   :  { %v177_v21 = vsel %vm176_vm0, %v173_v4, %v175_v5 }
  0x66   :  { %v195_v32 = vmul.f32 %v1640_v19, %v177_v21 }
  0x6c   :  { %v1617_v6 = vpop.permute.xlu2 %91 }
  0x74   :  { %v222_v9 = vpop.permute.xlu1 %221  ;;  %v1622_v10 = vpop.permute.xlu2 %30 }
  0x75   :  { %v216_v14 = vpop.permute.xlu0 %215 }
  0x76   :  { %v227_v24 = vsel %vm223_vm1, %v222_v9, %v216_v14 }
  0x77   :  { %v242_v35 = vmul.f32 %v1646_v22, %v227_v24  ;;  %v1707_v24 = vperm.slane %v1428_v59, 2 }
  0x7c   :  { %v1652_v25 = vpop.permute.xlu2 %61  ;;  %v171_v26 = vpop.permute.xlu1 %170 }
  0x7d   :  { %v178_v30 = vsel %vm176_vm0, %v171_v26, %v173_v4  ;;  %v220_v31 = vpop.permute.xlu0 %219 }
  0x7e   :  { %v194_v33 = vmul.f32 %v1642_v20, %v178_v30  ;;  %v224_v34 = vsel %vm223_vm1, %v220_v31, %v222_v9 }
  0x7f   :  { %v241_v36 = vmul.f32 %v1648_v23, %v224_v34 }
  0x80   :  { %v197_v37 = vpack.c.bf16 %v195_v32, %v194_v33 }
  0x81   :  { %v244_v41 = vpack.c.bf16 %v242_v35, %v241_v36 }
  0x82   :  { %v249_v44 = vunpack.c.l.b16 %v197_v37  ;;  %v250_v58 = vunpack.c.h.b16 %v197_v37 }
  0x83   :  { %v269_v47 = vunpack.c.l.b16 %v244_v41  ;;  %v270_v48 = vunpack.c.h.b16 %v244_v41 }
  0x84   :  { %v90_v49 = vpop.permute.xlu2 %89  ;;  %v169_v50 = vpop.permute.xlu1 %168  ;;  %v253_v63 = vpack.c.b16 %v249_v44, %v249_v44  ;;  %v254_v9 = vpack.c.b16 %v250_v58, %v250_v58 }
  0x85   :  { %v179_v54 = vsel %vm176_vm0, %v169_v50, %v171_v26  ;;  %v180_v55 = vsel %vm176_vm0, %v175_v5, %v169_v50  ;;  %v218_v56 = vpop.permute.xlu0 %217  ;;  %v273_v57 = vpack.c.b16 %v269_v47, %v269_v47  ;;  %v274_v3 = vpack.c.b16 %v270_v48, %v270_v48 }
  0x86   :  { %v192_v60 = vmul.f32 %v1671_v42, %v180_v55  ;;  %v193_v61 = vmul.f32 %v1673_v43, %v179_v54  ;;  %v225_v62 = vsel %vm223_vm1, %v218_v56, %v220_v31  ;;  %v226_v0 = vsel %vm223_vm1, %v216_v14, %v218_v56 }
  0x87   :  { %v240_v1 = vmul.f32 %v1677_v46, %v225_v62  ;;  %v310_v2 = vsel %vm149_vm3, %v273_v57, 0  ;;  %v239_v5 = vmul.f32 %v1675_v45, %v226_v0  ;;  %v313_v8 = vsel %vm149_vm3, %v274_v3, 0 }
  0x88   :  { %v196_v4 = vpack.c.bf16 %v193_v61, %v192_v60  ;;  %349 = vmatpush.bf16.msra.mxu2 %v310_v2  ;;  %v100_v16 = vsel %vm97_vm2, %v90_v49, %v1617_v6  ;;  %363 = vmatpush.bf16.msra.mxu3 %v313_v8  ;;  %v1703_v14 = vperm.slane %v1428_v59, 0  ;;  %v285_v21 = vsel %vm149_vm3, %v253_v63, %v263_v51 }
  0x89   :  { %v243_v17 = vpack.c.bf16 %v240_v1, %v239_v5  ;;  %v1709_v26 = vperm.slane %v1428_v59, 3  ;;  %v114_v35 = vmul.f32 %v1697_v7, %v100_v16  ;;  %v289_v36 = vsel %vm149_vm3, %v254_v9, %v264_v15 }
  0x8a   :  { %v247_v34 = vunpack.c.l.b16 %v196_v4  ;;  %v248_v39 = vunpack.c.h.b16 %v196_v4  ;;  %v261_v55 = vpack.c.b16 %v257_v18, %v257_v18  ;;  %v262_v59 = vpack.c.b16 %v258_v27, %v258_v27 }
  0x8b   :  { %v267_v32 = vunpack.c.l.b16 %v243_v17  ;;  %v268_v33 = vunpack.c.h.b16 %v243_v17 }
  0x8c   :  { %350 = vmatpush.bf16.msra.mxu2 %v285_v21  ;;  %v1712_v30 = vpop.permute.xlu2 %507  ;;  %v96_v31 = vpop.permute.xlu1 %95  ;;  %364 = vmatpush.bf16.msra.mxu3 %v289_v36  ;;  %v251_v54 = vpack.c.b16 %v247_v34, %v247_v34  ;;  %v252_v58 = vpack.c.b16 %v248_v39, %v248_v39  ;;  %v1427_v34 = vld [vmem:[%s2506_s1 + $0x1] ss:$8 sm:$0xf] }
  0x8d   :  { %v101_v37 = vsel %vm97_vm2, %v96_v31, %v90_v49  ;;  %v94_v38 = vpop.permute.xlu0 %93  ;;  %v271_v48 = vpack.c.b16 %v267_v32, %v267_v32  ;;  %v272_v51 = vpack.c.b16 %v268_v33, %v268_v33 }
  0x8e   :  { %v113_v41 = vmul.f32 %v1703_v14, %v101_v37  ;;  %v98_v44 = vsel %vm97_vm2, %v94_v38, %v96_v31  ;;  %v99_v47 = vsel %vm97_vm2, %v1617_v6, %v94_v38  ;;  %v43_v6 = vld [vmem:[%s2506_s1] ss:$8 sm:$0xf]  ;;  %v277_v0 = vsel %vm149_vm3, %v251_v54, %v261_v55 }
  0x8f   :  { %v115_v50 = vmul.f32 %v1707_v24, %v99_v47  ;;  %v116_v49 = vmul.f32 %v1709_v26, %v98_v44  ;;  %1440 = vmatmul.msk.bf16.vlgmr.msra.gmra.mxu2 %vm299_vm4, %v1492_v40  ;;  %v304_v53 = vsel %vm149_vm3, %v271_v48, 0  ;;  %v307_v57 = vsel %vm149_vm3, %v272_v51, 0  ;;  %1441 = vmatmul.msk.bf16.vlgmr.msra.gmra.mxu3 %vm299_vm4, %v1492_v40 }
  0x90   :  { %v117_v52 = vpack.c.bf16 %v114_v35, %v113_v41  ;;  %321 = vmatpush.bf16.msra.mxu0 %v304_v53  ;;  %335 = vmatpush.bf16.msra.mxu1 %v307_v57  ;;  %v1738_v2 = vperm.slane %v43_v6, 2  ;;  %v281_v5 = vsel %vm149_vm3, %v252_v58, %v262_v59  ;;  %v1743_v9 = vperm.slane %v43_v6, 3 }
  0x91   :  { %v118_v56 = vpack.c.bf16 %v116_v49, %v115_v50  ;;  %v1762_v37 = vperm.slane %v1427_v34, 2  ;;  %v1764_v38 = vperm.slane %v1427_v34, 3  ;;  %v1775_v53 = vperm.slane %v1427_v34, 0 }
  0x92   :  { %v141_v60 = vunpack.c.l.b16 %v117_v52  ;;  %v142_v61 = vunpack.c.h.b16 %v117_v52  ;;  %v1777_v54 = vperm.slane %v1427_v34, 1 }
  0x93   :  { %v143_v62 = vunpack.c.l.b16 %v118_v56  ;;  %v144_v63 = vunpack.c.h.b16 %v118_v56  ;;  %v1779_v56 = vperm.slane %v43_v6, 1 }
  0x94   :  { %v35_v1 = vpop.permute.xlu1 %34  ;;  %v145_v3 = vpack.c.b16 %v141_v60, %v141_v60  ;;  %v146_v4 = vpack.c.b16 %v142_v61, %v142_v61  ;;  %322 = vmatpush.bf16.msra.mxu0 %v277_v0  ;;  %v1741_v8 = vpop.permute.xlu2 %447  ;;  %336 = vmatpush.bf16.msra.mxu1 %v281_v5  ;;  %v1781_v60 = vperm.slane %v43_v6, 0 }
  0x95   :  { %v33_v15 = vpop.permute.xlu0 %32  ;;  %v147_v16 = vpack.c.b16 %v143_v62, %v143_v62  ;;  %v148_v17 = vpack.c.b16 %v144_v63, %v144_v63 }
  0x96   :  { %v39_v18 = vsel %vm38_vm5, %v33_v15, %v35_v1  ;;  %v40_v21 = vsel %vm38_vm5, %v1622_v10, %v33_v15  ;;  %v380_v27 = vsel %vm149_vm3, %v145_v3, 0  ;;  %v383_v31 = vsel %vm149_vm3, %v146_v4, 0 }
  0x97   :  { %v386_v32 = vsel %vm149_vm3, %v147_v16, 0  ;;  %v389_v33 = vsel %vm149_vm3, %v148_v17, 0  ;;  %v55_v35 = vmul.f32 %v1738_v2, %v40_v21  ;;  %v56_v36 = vmul.f32 %v1743_v9, %v39_v18  ;;  %1438 = vmatmul.msk.bf16.vlgmr.msra.gmra.mxu0 %vm299_vm4, %v1492_v40  ;;  %1439 = vmatmul.msk.bf16.vlgmr.msra.gmra.mxu1 %vm299_vm4, %v1492_v40  ;;  %v1452_v21 = vld [vmem:[%s2506_s1 + $0x20] ss:$8 sm:$0xf] }
  0x98   :  { %397 = vmatpush.bf16.msrb.mxu0 %v380_v27  ;;  %411 = vmatpush.bf16.msrb.mxu1 %v383_v31  ;;  %v1806_v34 = vperm.slane %v1452_v21, 3 }
  0x99   :  { %425 = vmatpush.bf16.msrb.mxu2 %v386_v32  ;;  %439 = vmatpush.bf16.msrb.mxu3 %v389_v33  ;;  %v58_v41 = vpack.c.bf16 %v56_v36, %v55_v35 }
  0x9b   :  { %v123_v52 = vunpack.c.l.b16 %v58_v41  ;;  %v124_v55 = vunpack.c.h.b16 %v58_v41  ;;  %v1810_v41 = vperm.slane %v1452_v21, 1 }
  0x9c   :  { %v66_v39 = vpop.permute.xlu1 %65  ;;  %v1771_v50 = vpop.permute.xlu2 %477 }
  0x9d   :  { %v64_v44 = vpop.permute.xlu0 %63  ;;  %v127_v0 = vpack.c.b16 %v123_v52, %v123_v52  ;;  %v128_v6 = vpack.c.b16 %v124_v55, %v124_v55 }
  0x9e   :  { %v68_v47 = vsel %vm67_vm6, %v64_v44, %v66_v39  ;;  %v69_v48 = vsel %vm67_vm6, %v1652_v25, %v64_v44  ;;  %v1812_v44 = vperm.slane %v1452_v21, 2 }
  0x9f   :  { %v85_v40 = vmul.f32 %v1762_v37, %v69_v48  ;;  %v86_v49 = vmul.f32 %v1764_v38, %v68_v47 }
  0xa1   :  { %v88_v51 = vpack.c.bf16 %v86_v49, %v85_v40 }
  0xa3   :  { %v133_v57 = vunpack.c.l.b16 %v88_v51  ;;  %v134_v58 = vunpack.c.h.b16 %v88_v51 }
  0xa4   :  { %v60_v59 = vpop.permute.xlu1 %59 }
  0xa5   :  { %v70_v61 = vsel %vm67_vm6, %v60_v59, %v1652_v25  ;;  %v71_v62 = vsel %vm67_vm6, %v66_v39, %v60_v59  ;;  %v29_v63 = vpop.permute.xlu0 %28  ;;  %v137_v3 = vpack.c.b16 %v133_v57, %v133_v57  ;;  %v138_v18 = vpack.c.b16 %v134_v58, %v134_v58 }
  0xa6   :  { %v83_v4 = vmul.f32 %v1775_v53, %v71_v62  ;;  %v84_v5 = vmul.f32 %v1777_v54, %v70_v61  ;;  %v41_v15 = vsel %vm38_vm5, %v29_v63, %v1622_v10  ;;  %v42_v16 = vsel %vm38_vm5, %v35_v1, %v29_v63  ;;  %v510_v10 = vpop.permute.xlu2 %509  ;;  %v1491_v1 = vld [vmem:[%s2507_s2] sm:$0xff] }
  0xa7   :  { %v54_v25 = vmul.f32 %v1779_v56, %v41_v15  ;;  %v160_v17 = vsel %vm149_vm3, %v127_v0, %v137_v3  ;;  %v53_v31 = vmul.f32 %v1781_v60, %v42_v16  ;;  %v164_v32 = vsel %vm149_vm3, %v128_v6, %v138_v18  ;;  %v1450_v16 = vld [vmem:[%s2506_s1 + $0x6] ss:$8 sm:$0xf] }
  0xa8   :  { %v87_v27 = vpack.c.bf16 %v84_v5, %v83_v4  ;;  %426 = vmatpush.bf16.msrb.mxu2 %v160_v17  ;;  %440 = vmatpush.bf16.msrb.mxu3 %v164_v32  ;;  %v1808_v39 = vperm.slane %v1452_v21, 0  ;;  %v518_v47 = vsel %vm515_vm7, %v1712_v30, %v510_v10  ;;  %v671_v32 = vld [vmem:[%s2508_s3 + $0x8] sm:$0xff] }
  0xa9   :  { %v57_v33 = vpack.c.bf16 %v54_v25, %v53_v31 }
  0xaa   :  { %v131_v35 = vunpack.c.l.b16 %v87_v27  ;;  %v132_v36 = vunpack.c.h.b16 %v87_v27  ;;  %v531_v63 = vmul.f32 %v1808_v39, %v518_v47  ;;  %v1837_v27 = vperm.slane %v1450_v16, 3 }
  0xab   :  { %1448 = vmatmul.msk.bf16.vlgmr.msrb.gmra.mxu2 %vm299_vm4, %v1491_v1  ;;  %v121_v40 = vunpack.c.l.b16 %v57_v33  ;;  %v122_v51 = vunpack.c.h.b16 %v57_v33  ;;  %1449 = vmatmul.msk.bf16.vlgmr.msrb.gmra.mxu3 %vm299_vm4, %v1491_v1  ;;  %v670_v33 = vld [vmem:[%s2508_s3] sm:$0xff] }
  0xac   :  { %v514_v48 = vpop.permute.xlu1 %513  ;;  %v135_v49 = vpack.c.b16 %v131_v35, %v131_v35  ;;  %v136_v57 = vpack.c.b16 %v132_v36, %v132_v36  ;;  %2540 = vst [vmem:[#allocation4_spill] sm:$0xff] %v1837_v27 }
  0xad   :  { %v519_v52 = vsel %vm515_vm7, %v514_v48, %v1712_v30  ;;  %v512_v55 = vpop.permute.xlu0 %511  ;;  %v125_v62 = vpack.c.b16 %v121_v40, %v121_v40  ;;  %v126_v30 = vpack.c.b16 %v122_v51, %v122_v51 }
  0xae   :  { %v534_v58 = vmul.f32 %v1806_v34, %v519_v52  ;;  %v516_v59 = vsel %vm515_vm7, %v512_v55, %v514_v48  ;;  %v517_v61 = vsel %vm515_vm7, %v510_v10, %v512_v55  ;;  %v1839_v10 = vperm.slane %v1450_v16, 2 }
  0xaf   :  { %v532_v0 = vmul.f32 %v1810_v41, %v517_v61  ;;  %v533_v3 = vmul.f32 %v1812_v44, %v516_v59  ;;  %v152_v4 = vsel %vm149_vm3, %v125_v62, %v135_v49  ;;  %v156_v6 = vsel %vm149_vm3, %v126_v30, %v136_v57 }
  0xb0   :  { %398 = vmatpush.bf16.msrb.mxu0 %v152_v4  ;;  %412 = vmatpush.bf16.msrb.mxu1 %v156_v6  ;;  %2541 = vst [vmem:[#allocation5_spill] sm:$0xff] %v1839_v10  ;;  %v1517_v52 = vmov 0  }
  0xb1   :  { %v535_v5 = vpack.c.bf16 %v532_v0, %v531_v63  ;;  %v536_v15 = vpack.c.bf16 %v534_v58, %v533_v3  ;;  %1507 = vset.pattern.permute.xlu0 %v1517_v52  ;;  %1506 = vset.pattern.permute.xlu2 %v1517_v52 }
  0xb2   :  { %679 = vperm.xlu0 %1507, %v671_v32   ;;  %674 = vperm.xlu2 %1506, %v670_v33   ;;  %v1878_v33 = vperm.slane %v1450_v16, 0 }
  0xb3   :  { %v559_v25 = vunpack.c.l.b16 %v535_v5  ;;  %v560_v17 = vunpack.c.h.b16 %v535_v5  ;;  %v561_v18 = vunpack.c.l.b16 %v536_v15  ;;  %v562_v21 = vunpack.c.h.b16 %v536_v15  ;;  %1446 = vmatmul.msk.bf16.vlgmr.msrb.gmra.mxu0 %vm299_vm4, %v1491_v1  ;;  %1447 = vmatmul.msk.bf16.vlgmr.msrb.gmra.mxu1 %vm299_vm4, %v1491_v1  ;;  %v1451_v1 = vld [vmem:[%s2506_s1 + $0x7] ss:$8 sm:$0xf] }
  0xb4   :  { %v454_v31 = vpop.permute.xlu1 %453  ;;  %v1863_v63 = vperm.slane %v1451_v1, 3  ;;  %1508 = vset.pattern.permute.xlu1 %v1517_v52  ;;  %v1865_v0 = vperm.slane %v1451_v1, 2  ;;  %v1876_v32 = vperm.slane %v1451_v1, 1  ;;  %2546 = vst [vmem:[#allocation10_spill] sm:$0xff] %v1878_v33 }
  0xb5   :  { %v459_v35 = vsel %vm455_vm8, %v454_v31, %v1741_v8  ;;  %v452_v36 = vpop.permute.xlu0 %451  ;;  %v563_v47 = vpack.c.b16 %v559_v25, %v559_v25  ;;  %v564_v48 = vpack.c.b16 %v560_v17, %v560_v17  ;;  %v565_v40 = vpack.c.b16 %v561_v18, %v561_v18 }
  0xb6   :  { %v456_v49 = vsel %vm455_vm8, %v452_v36, %v454_v31  ;;  %v566_v51 = vpack.c.b16 %v562_v21, %v562_v21  ;;  %v474_v59 = vmul.f32 %v1837_v27, %v459_v35  ;;  %2542 = vst [vmem:[#allocation6_spill] sm:$0xff] %v1863_v63  ;;  %v1874_v31 = vperm.slane %v1451_v1, 0 }
  0xb7   :  { %v595_v55 = vsel %vm149_vm3, %v563_v47, 0  ;;  %v598_v57 = vsel %vm149_vm3, %v564_v48, 0  ;;  %v601_v58 = vsel %vm149_vm3, %v565_v40, 0  ;;  %v473_v61 = vmul.f32 %v1839_v10, %v456_v49  ;;  %2543 = vst [vmem:[#allocation7_spill] sm:$0xff] %v1865_v0 }
  0xb8   :  { %612 = vmatpush.bf16.msra.mxu0 %v595_v55  ;;  %626 = vmatpush.bf16.msra.mxu1 %v598_v57  ;;  %v604_v62 = vsel %vm149_vm3, %v566_v51, 0  ;;  %2544 = vst [vmem:[#allocation8_spill] sm:$0xff] %v1874_v31  ;;  %v1880_v35 = vperm.slane %v1450_v16, 1 }
  0xb9   :  { %640 = vmatpush.bf16.msra.mxu2 %v601_v58  ;;  %654 = vmatpush.bf16.msra.mxu3 %v604_v62  ;;  %v476_v3 = vpack.c.bf16 %v474_v59, %v473_v61  ;;  %2545 = vst [vmem:[#allocation9_spill] sm:$0xff] %v1876_v32 }
  0xba   :  { %2547 = vst [vmem:[#allocation11_spill] sm:$0xff] %v1880_v35 }
  0xbb   :  { %v541_v17 = vunpack.c.l.b16 %v476_v3  ;;  %v542_v18 = vunpack.c.h.b16 %v476_v3 }
  0xbc   :  { %v484_v30 = vpop.permute.xlu1 %483 }
  0xbd   :  { %v489_v4 = vsel %vm485_vm9, %v484_v30, %v1771_v50  ;;  %v482_v5 = vpop.permute.xlu0 %481  ;;  %v545_v49 = vpack.c.b16 %v541_v17, %v541_v17  ;;  %v546_v51 = vpack.c.b16 %v542_v18, %v542_v18 }
  0xbe   :  { %v504_v15 = vmul.f32 %v1863_v63, %v489_v4  ;;  %v486_v6 = vsel %vm485_vm9, %v482_v5, %v484_v30 }
  0xbf   :  { %v503_v25 = vmul.f32 %v1865_v0, %v486_v6 }
  0xc1   :  { %v506_v21 = vpack.c.bf16 %v504_v15, %v503_v25 }
  0xc3   :  { %v551_v47 = vunpack.c.l.b16 %v506_v21  ;;  %v552_v48 = vunpack.c.h.b16 %v506_v21 }
  0xc4   :  { %v480_v40 = vpop.permute.xlu1 %479 }
  0xc5   :  { %v487_v52 = vsel %vm485_vm9, %v480_v40, %v482_v5  ;;  %v488_v55 = vsel %vm485_vm9, %v1771_v50, %v480_v40  ;;  %v450_v57 = vpop.permute.xlu0 %449  ;;  %v555_v58 = vpack.c.b16 %v551_v47, %v551_v47  ;;  %v556_v1 = vpack.c.b16 %v552_v48, %v552_v48  ;;  %v1493_v5 = vld [vmem:[%s2507_s2 + $0x10] sm:$0xff] }
  0xc6   :  { %v501_v59 = vmul.f32 %v1874_v31, %v488_v55  ;;  %v502_v16 = vmul.f32 %v1876_v32, %v487_v52  ;;  %v457_v61 = vsel %vm455_vm8, %v450_v57, %v452_v36  ;;  %v458_v62 = vsel %vm455_vm8, %v1741_v8, %v450_v57 }
  0xc7   :  { %v471_v3 = vmul.f32 %v1878_v33, %v458_v62  ;;  %v472_v30 = vmul.f32 %v1880_v35, %v457_v61  ;;  %v577_v50 = vsel %vm149_vm3, %v545_v49, %v555_v58  ;;  %v581_v4 = vsel %vm149_vm3, %v546_v51, %v556_v1 }
  0xc8   :  { %v505_v15 = vpack.c.bf16 %v502_v16, %v501_v59  ;;  %641 = vmatpush.bf16.msra.mxu2 %v577_v50  ;;  %655 = vmatpush.bf16.msra.mxu3 %v581_v4 }
  0xc9   :  { %v475_v36 = vpack.c.bf16 %v472_v30, %v471_v3 }
  0xca   :  { %v549_v6 = vunpack.c.l.b16 %v505_v15  ;;  %v550_v25 = vunpack.c.h.b16 %v505_v15 }
  0xcb   :  { %1461 = vmatmul.msk.bf16.vlgmr.msra.gmra.mxu2 %vm299_vm4, %v1493_v5  ;;  %1462 = vmatmul.msk.bf16.vlgmr.msra.gmra.mxu3 %vm299_vm4, %v1493_v5  ;;  %v539_v8 = vunpack.c.l.b16 %v475_v36  ;;  %v540_v17 = vunpack.c.h.b16 %v475_v36 }
  0xcc   :  { %v553_v18 = vpack.c.b16 %v549_v6, %v549_v6  ;;  %v554_v21 = vpack.c.b16 %v550_v25, %v550_v25 }
  0xcd   :  { %v543_v47 = vpack.c.b16 %v539_v8, %v539_v8  ;;  %v544_v48 = vpack.c.b16 %v540_v17, %v540_v17 }
  0xcf   :  { %v569_v40 = vsel %vm149_vm3, %v543_v47, %v553_v18  ;;  %v573_v49 = vsel %vm149_vm3, %v544_v48, %v554_v21 }
  0xd0   :  { %613 = vmatpush.bf16.msra.mxu0 %v569_v40  ;;  %627 = vmatpush.bf16.msra.mxu1 %v573_v49 }
  0xd3   :  { %1459 = vmatmul.msk.bf16.vlgmr.msra.gmra.mxu0 %vm299_vm4, %v1493_v5  ;;  %1460 = vmatmul.msk.bf16.vlgmr.msra.gmra.mxu1 %vm299_vm4, %v1493_v5 }
 0x10c   :  { %v675_v21 = vpop.permute.xlu2 %674 }
 0x112   :  { %v352_v51 = vpop.f32.mrf.mxu2  ;;  %v366_v52 = vpop.f32.mrf.mxu3 }
 0x114   :  { %v324_v55 = vpop.f32.mrf.mxu0  ;;  %v338_v57 = vpop.f32.mrf.mxu1 }
 0x11a   :  { %v354_v58 = vpop.f32.mrf.mxu2  ;;  %v368_v1 = vpop.f32.mrf.mxu3 }
 0x11c   :  { %v326_v59 = vpop.f32.mrf.mxu0  ;;  %v340_v16 = vpop.f32.mrf.mxu1 }
 0x12e   :  { %v428_v61 = vpop.f32.mrf.mxu2  ;;  %v442_v62 = vpop.f32.mrf.mxu3 }
 0x130   :  { %v400_v3 = vpop.f32.mrf.mxu0  ;;  %v414_v30 = vpop.f32.mrf.mxu1 }
 0x131   :  { %v401_v17 = vadd.f32 %v400_v3, %v324_v55  ;;  %v415_v18 = vadd.f32 %v414_v30, %v338_v57  ;;  %v429_v57 = vadd.f32 %v428_v61, %v352_v51  ;;  %v680_v30 = vpop.permute.xlu0 %679 }
 0x136   :  { %v430_v50 = vpop.f32.mrf.mxu2  ;;  %v444_v15 = vpop.f32.mrf.mxu3 }
 0x137   :  { %v1907_v4 = vadd.f32 %v430_v50, %v354_v58  ;;  %v1909_v6 = vadd.f32 %v444_v15, %v368_v1 }
 0x138   :  { %v402_v36 = vpop.f32.mrf.mxu0  ;;  %v416_v25 = vpop.f32.mrf.mxu1 }
 0x139   :  { %v403_v5 = vadd.f32 %v402_v36, %v326_v59  ;;  %v417_v8 = vadd.f32 %v416_v25, %v340_v16 }
 0x14e   :  { %v643_v59 = vpop.f32.mrf.mxu2 }
 0x14f   :  { %v664_v16 = vadd.f32 %v643_v59, %v429_v57 }
 0x150   :  { %v615_v47 = vpop.f32.mrf.mxu0  ;;  %v629_v48 = vpop.f32.mrf.mxu1 }
 0x151   :  { %v662_v40 = vadd.f32 %v615_v47, %v401_v17  ;;  %v663_v49 = vadd.f32 %v629_v48, %v415_v18 }
 0x153   :  { %v682_v35 = vadd.f32 %v675_v21, %v662_v40  ;;  %v683_v33 = vadd.f32 %v675_v21, %v663_v49 }
 0x155   :  { %v1911_v27 = vmax.f32 %v682_v35, 0.0  ;;  %v1913_v58 = vmax.f32 %v683_v33, 0.0  ;;  %v443_v33 = vadd.f32 %v442_v62, %v366_v52  ;;  %v657_v35 = vpop.f32.mrf.mxu3  ;;  %v684_v52 = vadd.f32 %v675_v21, %v664_v16 }
 0x157   :  { %774 = vrot.lane.b32.xlu0 %v1913_v58, %s1511_s7  ;;  %920 = vrot.lane.b32.xlu2 %v1913_v58, %s1509_s27  ;;  %v665_v55 = vadd.f32 %v657_v35, %v443_v33  ;;  %v1941_v62 = vmax.f32 %v684_v52, 0.0 }
 0x158   :  { %916 = vrot.lane.b32.xlu1 %v1911_v27, %s1509_s27  ;;  %v617_v51 = vpop.f32.mrf.mxu0  ;;  %v631_v15 = vpop.f32.mrf.mxu1 }
 0x159   :  { %v685_v1 = vadd.f32 %v675_v21, %v665_v55  ;;  %2549 = vst [vmem:[#allocation13_spill] sm:$0xff] %v1941_v62  ;;  %v666_v61 = vadd.f32 %v617_v51, %v403_v5  ;;  %v667_v25 = vadd.f32 %v631_v15, %v417_v8  ;;  %v645_v8 = vpop.f32.mrf.mxu2 }
 0x15a   :  { %v668_v18 = vadd.f32 %v645_v8, %v1907_v4 }
 0x15b   :  { %v1933_v3 = vmax.f32 %v685_v1, 0.0  ;;  %v686_v50 = vadd.f32 %v680_v30, %v666_v61  ;;  %v687_v5 = vadd.f32 %v680_v30, %v667_v25 }
 0x15c   :  { %v688_v21 = vadd.f32 %v680_v30, %v668_v18 }
 0x15d   :  { %2548 = vst [vmem:[#allocation12_spill] sm:$0xff] %v1933_v3  ;;  %v1967_v36 = vmax.f32 %v686_v50, 0.0  ;;  %v1975_v17 = vmax.f32 %v687_v5, 0.0  ;;  %v659_v48 = vpop.f32.mrf.mxu3 }
 0x15e   :  { %v669_v40 = vadd.f32 %v659_v48, %v1909_v6  ;;  %v1997_v49 = vmax.f32 %v688_v21, 0.0 }
 0x15f   :  { %738 = vrot.lane.b32.xlu0 %v1913_v58, %s1513_s0  ;;  %702 = vrot.lane.b32.xlu2 %v1913_v58, %s1512_s8 }
 0x160   :  { %872 = vrot.lane.b32.xlu1 %v1913_v58, %s1510_s28  ;;  %v689_v4 = vadd.f32 %v680_v30, %v669_v40 }
 0x162   :  { %v2007_v35 = vmax.f32 %v689_v4, 0.0 }
 0x167   :  { %734 = vrot.lane.b32.xlu2 %v1911_v27, %s1513_s0  ;;  %770 = vrot.lane.b32.xlu0 %v1911_v27, %s1511_s7 }
 0x168   :  { %868 = vrot.lane.b32.xlu1 %v1911_v27, %s1510_s28 }
 0x16f   :  { %880 = vrot.lane.b32.xlu2 %v1933_v3, %s1510_s28  ;;  %1216 = vrot.lane.b32.xlu0 %v1911_v27, %s1514_s9 }
 0x170   :  { %698 = vrot.lane.b32.xlu1 %v1911_v27, %s1512_s8 }
 0x177   :  { %778 = vrot.lane.b32.xlu2 %v1941_v62, %s1511_s7  ;;  %1180 = vrot.lane.b32.xlu0 %v1911_v27, %s1516_s11 }
 0x178   :  { %924 = vrot.lane.b32.xlu1 %v1941_v62, %s1509_s27 }
 0x17f   :  { %742 = vrot.lane.b32.xlu2 %v1941_v62, %s1513_s0  ;;  %1220 = vrot.lane.b32.xlu0 %v1913_v58, %s1514_s9 }
 0x180   :  { %782 = vrot.lane.b32.xlu1 %v1933_v3, %s1511_s7 }
 0x187   :  { %1224 = vrot.lane.b32.xlu2 %v1941_v62, %s1514_s9  ;;  %928 = vrot.lane.b32.xlu0 %v1933_v3, %s1509_s27 }
 0x188   :  { %746 = vrot.lane.b32.xlu1 %v1933_v3, %s1513_s0 }
 0x18f   :  { %1188 = vrot.lane.b32.xlu2 %v1941_v62, %s1516_s11  ;;  %876 = vrot.lane.b32.xlu0 %v1941_v62, %s1510_s28 }
 0x190   :  { %706 = vrot.lane.b32.xlu1 %v1941_v62, %s1512_s8 }
 0x197   :  { %918 = vrot.lane.b32.xlu2 %v1967_v36, %s1509_s27  ;;  %710 = vrot.lane.b32.xlu0 %v1933_v3, %s1512_s8 }
 0x198   :  { %1228 = vrot.lane.b32.xlu1 %v1933_v3, %s1514_s9 }
 0x19f   :  { %874 = vrot.lane.b32.xlu2 %v1975_v17, %s1510_s28  ;;  %922 = vrot.lane.b32.xlu0 %v1975_v17, %s1509_s27 }
 0x1a0   :  { %1192 = vrot.lane.b32.xlu1 %v1933_v3, %s1516_s11 }
 0x1a7   :  { %870 = vrot.lane.b32.xlu2 %v1967_v36, %s1510_s28  ;;  %704 = vrot.lane.b32.xlu0 %v1975_v17, %s1512_s8 }
 0x1a8   :  { %776 = vrot.lane.b32.xlu1 %v1975_v17, %s1511_s7 }
 0x1af   :  { %700 = vrot.lane.b32.xlu2 %v1967_v36, %s1512_s8  ;;  %736 = vrot.lane.b32.xlu0 %v1967_v36, %s1513_s0 }
 0x1b0   :  { %740 = vrot.lane.b32.xlu1 %v1975_v17, %s1513_s0 }
 0x1b1   :  { %v921_v47 = vpop.permute.xlu2 %920 }
 0x1b7   :  { %926 = vrot.lane.b32.xlu2 %v1997_v49, %s1509_s27  ;;  %1146 = vrot.lane.b32.xlu0 %v1967_v36, %s1515_s10 }
 0x1b8   :  { %772 = vrot.lane.b32.xlu1 %v1967_v36, %s1511_s7 }
 0x1b9   :  { %v2005_v33 = vpop.permute.xlu2 %702 }
 0x1bf   :  { %1144 = vrot.lane.b32.xlu2 %v1911_v27, %s1515_s10  ;;  %882 = vrot.lane.b32.xlu0 %v2007_v35, %s1510_s28 }
 0x1c0   :  { %1218 = vrot.lane.b32.xlu1 %v1967_v36, %s1514_s9 }
 0x1c1   :  { %v2015_v6 = vpop.permute.xlu2 %734 }
 0x1c7   :  { %784 = vrot.lane.b32.xlu2 %v2007_v35, %s1511_s7  ;;  %780 = vrot.lane.b32.xlu0 %v1997_v49, %s1511_s7 }
 0x1c8   :  { %1182 = vrot.lane.b32.xlu1 %v1967_v36, %s1516_s11 }
 0x1c9   :  { %v775_v55 = vpop.permute.xlu0 %774  ;;  %v2023_v57 = vpop.permute.xlu2 %880 }
 0x1ca   :  { %v2025_v1 = vpop.permute.xlu1 %916 }
 0x1cb   :  { %v936_v59 = vsel %vm223_vm1, %v2025_v1, %v921_v47 }
 0x1cc   :  { %v940_v10 = vmul.f32 %v936_v59, %v1675_v45 }
 0x1cf   :  { %748 = vrot.lane.b32.xlu2 %v2007_v35, %s1513_s0  ;;  %744 = vrot.lane.b32.xlu0 %v1997_v49, %s1513_s0 }
 0x1d0   :  { %930 = vrot.lane.b32.xlu1 %v2007_v35, %s1509_s27 }
 0x1d1   :  { %v739_v16 = vpop.permute.xlu0 %738  ;;  %v779_v52 = vpop.permute.xlu2 %778 }
 0x1d2   :  { %v2039_v51 = vsel %vm67_vm6, %v2015_v6, %v739_v16  ;;  %v788_v61 = vsel %vm97_vm2, %v775_v55, %v779_v52  ;;  %v2043_v30 = vpop.permute.xlu1 %872 }
 0x1d7   :  { %708 = vrot.lane.b32.xlu2 %v1997_v49, %s1512_s8  ;;  %1156 = vrot.lane.b32.xlu0 %v1933_v3, %s1515_s10  ;;  %v796_v3 = vmul.f32 %v788_v61, %v1707_v24 }
 0x1d8   :  { %878 = vrot.lane.b32.xlu1 %v1997_v49, %s1510_s28 }
 0x1d9   :  { %v743_v50 = vpop.permute.xlu2 %742  ;;  %v771_v15 = vpop.permute.xlu0 %770 }
 0x1da   :  { %v752_v25 = vsel %vm67_vm6, %v739_v16, %v743_v50  ;;  %v790_v5 = vsel %vm97_vm2, %v771_v15, %v775_v55  ;;  %v869_v8 = vpop.permute.xlu1 %868 }
 0x1db   :  { %v888_v18 = vsel %vm176_vm0, %v869_v8, %v2043_v30  ;;  %v890_v21 = vsel %vm176_vm0, %v2023_v57, %v869_v8  ;;  %v795_v12 = vmul.f32 %v790_v5, %v1697_v7 }
 0x1dc   :  { %v892_v48 = vmul.f32 %v890_v21, %v1671_v42  ;;  %v893_v40 = vmul.f32 %v888_v18, %v1673_v43 }
 0x1de   :  { %v2063_v4 = vpack.c.bf16 %v893_v40, %v892_v48 }
 0x1df   :  { %1184 = vrot.lane.b32.xlu2 %v1913_v58, %s1516_s11  ;;  %1226 = vrot.lane.b32.xlu0 %v1997_v49, %s1514_s9 }
 0x1e0   :  { %1222 = vrot.lane.b32.xlu1 %v1975_v17, %s1514_s9 }
 0x1e1   :  { %v2071_v55 = vpop.permute.xlu2 %1224  ;;  %v2073_v16 = vpop.permute.xlu0 %1216 }
 0x1e2   :  { %v2075_v8 = vpop.permute.xlu1 %698 }
 0x1e7   :  { %1230 = vrot.lane.b32.xlu2 %v2007_v35, %s1514_s9  ;;  %1190 = vrot.lane.b32.xlu0 %v1997_v49, %s1516_s11 }
 0x1e8   :  { %712 = vrot.lane.b32.xlu1 %v2007_v35, %s1512_s8 }
 0x1e9   :  { %v2083_v18 = vpop.permute.xlu2 %1188  ;;  %v2085_v21 = vpop.permute.xlu0 %1180 }
 0x1ea   :  { %2550 = vst [vmem:[#allocation14_spill] sm:$0xff] %v2083_v18  ;;  %v925_v48 = vpop.permute.xlu1 %924 }
 0x1eb   :  { %2551 = vst [vmem:[#allocation15_spill] sm:$0xff] %v2085_v21  ;;  %v934_v40 = vsel %vm223_vm1, %v921_v47, %v925_v48 }
 0x1ec   :  { %v941_v32 = vmul.f32 %v934_v40, %v1677_v46 }
 0x1ee   :  { %v2091_v31 = vpack.c.bf16 %v941_v32, %v940_v10 }
 0x1ef   :  { %1194 = vrot.lane.b32.xlu2 %v2007_v35, %s1516_s11  ;;  %1186 = vrot.lane.b32.xlu0 %v1975_v17, %s1516_s11 }
 0x1f0   :  { %1152 = vrot.lane.b32.xlu1 %v1941_v62, %s1515_s10 }
 0x1f1   :  { %v2099_v63 = vpop.permute.xlu2 %918  ;;  %v1221_v0 = vpop.permute.xlu0 %1220 }
 0x1f2   :  { %v1234_v47 = vsel %vm515_vm7, %v1221_v0, %v2071_v55  ;;  %v1236_v10 = vsel %vm515_vm7, %v2073_v16, %v1221_v0  ;;  %v783_v32 = vpop.permute.xlu1 %782  ;;  %v1387_v0 = vld [vmem:[%s2509_s5] sm:$0xff] }
 0x1f3   :  { %v1240_v59 = vmul.f32 %v1236_v10, %v1808_v39  ;;  %v1241_v40 = vmul.f32 %v1234_v47, %v1810_v41  ;;  %v786_v21 = vsel %vm97_vm2, %v779_v52, %v783_v32  ;;  %v792_v18 = vsel %vm97_vm2, %v783_v32, %v771_v15 }
 0x1f4   :  { %v794_v62 = vmul.f32 %v792_v18, %v1703_v14  ;;  %v797_v11 = vmul.f32 %v786_v21, %v1709_v26  ;;  %v759_v32 = vmul.f32 %v2039_v51, %v1777_v54 }
 0x1f5   :  { %v2120_v10 = vpack.c.bf16 %v1241_v40, %v1240_v59 }
 0x1f6   :  { %v2122_v47 = vpack.c.bf16 %v795_v12, %v794_v62  ;;  %v2124_v52 = vpack.c.bf16 %v797_v11, %v796_v3 }
 0x1f7   :  { %1154 = vrot.lane.b32.xlu2 %v1997_v49, %s1515_s10  ;;  %1391 = vperm.xlu0 %1507, %v1387_v0  }
 0x1f8   :  { %1158 = vrot.lane.b32.xlu1 %v2007_v35, %s1515_s10 }
 0x1f9   :  { %v2130_v61 = vpop.permute.xlu2 %874  ;;  %v929_v15 = vpop.permute.xlu0 %928 }
 0x1fa   :  { %v932_v5 = vsel %vm223_vm1, %v925_v48, %v929_v15  ;;  %v938_v12 = vsel %vm223_vm1, %v929_v15, %v2025_v1  ;;  %v747_v62 = vpop.permute.xlu1 %746  ;;  %v760_v48 = vmul.f32 %v752_v25, %v1762_v37 }
 0x1fb   :  { %v942_v11 = vmul.f32 %v932_v5, %v1648_v23  ;;  %v943_v3 = vmul.f32 %v938_v12, %v1646_v22  ;;  %v750_v18 = vsel %vm67_vm6, %v743_v50, %v747_v62  ;;  %v756_v21 = vsel %vm67_vm6, %v747_v62, %v2015_v6 }
 0x1fc   :  { %v758_v59 = vmul.f32 %v756_v21, %v1775_v53  ;;  %v761_v1 = vmul.f32 %v750_v18, %v1764_v38 }
 0x1fd   :  { %v2149_v40 = vpack.c.bf16 %v943_v3, %v942_v11  ;;  %v718_v3 = vsel %vm38_vm5, %v2075_v8, %v2005_v33 }
 0x1fe   :  { %v2151_v0 = vpack.c.bf16 %v759_v32, %v758_v59  ;;  %v2153_v15 = vpack.c.bf16 %v761_v1, %v760_v48 }
 0x1ff   :  { %1150 = vrot.lane.b32.xlu2 %v1975_v17, %s1515_s10 }
 0x200   :  { %1148 = vrot.lane.b32.xlu1 %v1913_v58, %s1515_s10 }
 0x201   :  { %v2159_v6 = vpop.permute.xlu2 %870  ;;  %v877_v51 = vpop.permute.xlu0 %876 }
 0x202   :  { %v884_v50 = vsel %vm176_vm0, %v877_v51, %v2023_v57  ;;  %v886_v25 = vsel %vm176_vm0, %v2043_v30, %v877_v51  ;;  %v707_v5 = vpop.permute.xlu1 %706  ;;  %v723_v30 = vmul.f32 %v718_v3, %v1779_v56 }
 0x203   :  { %v894_v12 = vmul.f32 %v886_v25, %v1642_v20  ;;  %v895_v62 = vmul.f32 %v884_v50, %v1640_v19  ;;  %v716_v57 = vsel %vm38_vm5, %v2005_v33, %v707_v5 }
 0x204   :  { %v724_v32 = vmul.f32 %v716_v57, %v1738_v2 }
 0x205   :  { %v2169_v11 = vpack.c.bf16 %v895_v62, %v894_v12 }
 0x209   :  { %v2178_v18 = vpop.permute.xlu2 %700  ;;  %v711_v21 = vpop.permute.xlu0 %710 }
 0x20a   :  { %v714_v48 = vsel %vm38_vm5, %v707_v5, %v711_v21  ;;  %v720_v59 = vsel %vm38_vm5, %v711_v21, %v2075_v8  ;;  %v1229_v1 = vpop.permute.xlu1 %1228 }
 0x20b   :  { %v722_v51 = vmul.f32 %v720_v59, %v1781_v60  ;;  %v725_v50 = vmul.f32 %v714_v48, %v1743_v9  ;;  %v1232_v33 = vsel %vm515_vm7, %v2071_v55, %v1229_v1  ;;  %v1238_v25 = vsel %vm515_vm7, %v1229_v1, %v2073_v16 }
 0x20c   :  { %v1242_v12 = vmul.f32 %v1232_v33, %v1812_v44  ;;  %v1243_v5 = vmul.f32 %v1238_v25, %v1806_v34  ;;  %v908_v55 = vmul.f32 %v1967_v36, %v1654_v28  ;;  %v909_v48 = vmul.f32 %v1975_v17, %v1656_v29 }
 0x20d   :  { %v2197_v62 = vpack.c.bf16 %v723_v30, %v722_v51  ;;  %v2199_v8 = vpack.c.bf16 %v725_v50, %v724_v32  ;;  %v904_v59 = vmul.f32 %v1911_v27, %v1654_v28  ;;  %v905_v1 = vmul.f32 %v1913_v58, %v1656_v29 }
 0x20e   :  { %v2201_v3 = vpack.c.bf16 %v1243_v5, %v1242_v12  ;;  %v914_v50 = vpack.c.bf16 %v909_v48, %v908_v55  ;;  %v996_v25 = vunpack.c.l.b16 %v2091_v31  ;;  %v997_v12 = vunpack.c.h.b16 %v2091_v31 }
 0x20f   :  { %2552 = vst [vmem:[#allocation16_spill] sm:$0xff] %v2199_v8  ;;  %v912_v33 = vpack.c.bf16 %v905_v1, %v904_v59 }
 0x210   :  { %2553 = vst [vmem:[#allocation17_spill] sm:$0xff] %v2201_v3  ;;  %v980_v29 = vunpack.c.l.b16 %v914_v50  ;;  %v981_v58 = vunpack.c.h.b16 %v914_v50 }
 0x211   :  { %v2203_v57 = vpop.permute.xlu2 %926  ;;  %v923_v21 = vpop.permute.xlu0 %922  ;;  %v977_v55 = vunpack.c.h.b16 %v912_v33 }
 0x212   :  { %v935_v16 = vsel %vm223_vm1, %v923_v21, %v2203_v57  ;;  %v937_v30 = vsel %vm223_vm1, %v2099_v63, %v923_v21  ;;  %v2215_v32 = vpop.permute.xlu1 %1192 }
 0x213   :  { %v944_v36 = vmul.f32 %v937_v30, %v1675_v45  ;;  %v945_v17 = vmul.f32 %v935_v16, %v1677_v46  ;;  %v976_v46 = vunpack.c.l.b16 %v912_v33  ;;  %v985_v16 = vpack.c.b16 %v981_v58, %v977_v55 }
 0x215   :  { %v950_v51 = vpack.c.bf16 %v945_v17, %v944_v36  ;;  %v984_v48 = vpack.c.b16 %v980_v29, %v976_v46 }
 0x217   :  { %v1000_v5 = vunpack.c.l.b16 %v950_v51  ;;  %v1001_v21 = vunpack.c.h.b16 %v950_v51 }
 0x219   :  { %v2225_v8 = vpop.permute.xlu2 %1144  ;;  %v2227_v3 = vpop.permute.xlu0 %704  ;;  %v1004_v28 = vpack.c.b16 %v1000_v5, %v996_v25  ;;  %v1005_v27 = vpack.c.b16 %v1001_v21, %v997_v12  ;;  %v889_v5 = vsel %vm176_vm0, %v2159_v6, %v2130_v61 }
 0x21a   :  { %v2229_v45 = vpop.permute.xlu1 %776  ;;  %v897_v58 = vmul.f32 %v889_v5, %v1673_v43  ;;  %v851_v43 = vunpack.c.h.b16 %v2122_v47 }
 0x21b   :  { %1029 = vmatpush.bf16.msrb.mxu0 %v1004_v28  ;;  %1043 = vmatpush.bf16.msrb.mxu1 %v1005_v27 }
 0x21f   :  { %1030 = vmatpush.bf16.msrb.mxu0 %v984_v48  ;;  %1044 = vmatpush.bf16.msrb.mxu1 %v985_v16 }
 0x221   :  { %v2231_v31 = vpop.permute.xlu2 %784  ;;  %v737_v30 = vpop.permute.xlu0 %736 }
 0x222   :  { %v2233_v59 = vpop.permute.xlu1 %740 }
 0x223   :  { %v755_v21 = vsel %vm67_vm6, %v737_v30, %v2233_v59 }
 0x224   :  { %v763_v55 = vmul.f32 %v755_v21, %v1777_v54 }
 0x229   :  { %v2235_v1 = vpop.permute.xlu0 %1146  ;;  %v2237_v17 = vpop.permute.xlu2 %748 }
 0x22a   :  { %v773_v36 = vpop.permute.xlu1 %772  ;;  %v757_v12 = vsel %vm67_vm6, %v2237_v17, %v737_v30 }
 0x22b   :  { %v791_v51 = vsel %vm97_vm2, %v773_v36, %v2229_v45  ;;  %v793_v50 = vsel %vm97_vm2, %v2231_v31, %v773_v36  ;;  %v762_v27 = vmul.f32 %v757_v12, %v1775_v53  ;;  %v956_v53 = vunpack.c.l.b16 %v2063_v4 }
 0x22c   :  { %v798_v33 = vmul.f32 %v793_v50, %v1703_v14  ;;  %v799_v25 = vmul.f32 %v791_v51, %v1697_v7 }
 0x22d   :  { %v768_v30 = vpack.c.bf16 %v763_v55, %v762_v27  ;;  %v2280_v27 = vld [vmem:[%s2510_s4 + $0x8] sm:$0xff] }
 0x22e   :  { %v804_v14 = vpack.c.bf16 %v799_v25, %v798_v33  ;;  %v957_v33 = vunpack.c.h.b16 %v2063_v4  ;;  %v850_v25 = vunpack.c.l.b16 %v2122_v47  ;;  %v830_v47 = vunpack.c.l.b16 %v2151_v0 }
 0x22f   :  { %v835_v4 = vunpack.c.h.b16 %v768_v30 }
 0x230   :  { %v854_v36 = vunpack.c.l.b16 %v804_v14  ;;  %v855_v51 = vunpack.c.h.b16 %v804_v14 }
 0x231   :  { %v2257_v28 = vpop.permute.xlu0 %882  ;;  %v2269_v48 = vpop.permute.xlu2 %708 }
 0x232   :  { %v891_v7 = vsel %vm176_vm0, %v2257_v28, %v2159_v6  ;;  %v2264_v29 = vpop.permute.xlu1 %1218  ;;  %v858_v21 = vpack.c.b16 %v854_v36, %v850_v25  ;;  %v859_v14 = vpack.c.b16 %v855_v51, %v851_v43  ;;  %v2554_v36 = vld [vmem:[#allocation2_spill] sm:$0xff] }
 0x233   :  { %v896_v46 = vmul.f32 %v891_v7, %v1671_v42  ;;  %v834_v7 = vunpack.c.l.b16 %v768_v30 }
 0x235   :  { %v902_v16 = vpack.c.bf16 %v897_v58, %v896_v46  ;;  %v831_v58 = vunpack.c.h.b16 %v2151_v0  ;;  %v838_v46 = vpack.c.b16 %v834_v7, %v830_v47  ;;  %v910_v0 = vmul.f32 %v1997_v49, %v2554_v36 }
 0x237   :  { %v960_v50 = vunpack.c.l.b16 %v902_v16  ;;  %v961_v6 = vunpack.c.h.b16 %v902_v16  ;;  %v839_v16 = vpack.c.b16 %v835_v4, %v831_v58 }
 0x239   :  { %v781_v12 = vpop.permute.xlu0 %780  ;;  %v964_v42 = vpack.c.b16 %v960_v50, %v956_v53  ;;  %v965_v5 = vpack.c.b16 %v961_v6, %v957_v33  ;;  %v2286_v55 = vpop.permute.xlu2 %1184  ;;  %v2555_v53 = vld [vmem:[#allocation13_spill] sm:$0xff]  ;;  %v2556_v50 = vld [vmem:[#allocation3_spill] sm:$0xff]  ;;  %v2557_v33 = vld [vmem:[#allocation12_spill] sm:$0xff] }
 0x23a   :  { %v2275_v54 = vpop.permute.xlu1 %1182  ;;  %v906_v51 = vmul.f32 %v2555_v53, %v2554_v36  ;;  %v907_v6 = vmul.f32 %v2557_v33, %v2556_v50  ;;  %v911_v25 = vmul.f32 %v2007_v35, %v2556_v50 }
 0x23b   :  { %1031 = vmatpush.bf16.msrb.mxu0 %v964_v42  ;;  %1045 = vmatpush.bf16.msrb.mxu1 %v965_v5  ;;  %v787_v42 = vsel %vm97_vm2, %v781_v12, %v2231_v31  ;;  %v789_v5 = vsel %vm97_vm2, %v2229_v45, %v781_v12 }
 0x23c   :  { %v915_v4 = vpack.c.bf16 %v911_v25, %v910_v0  ;;  %v800_v31 = vmul.f32 %v789_v5, %v1707_v24  ;;  %v801_v47 = vmul.f32 %v787_v42, %v1709_v26  ;;  %v998_v24 = vunpack.c.l.b16 %v2149_v40 }
 0x23d   :  { %v999_v26 = vunpack.c.h.b16 %v2149_v40  ;;  %v958_v5 = vunpack.c.l.b16 %v2169_v11 }
 0x23e   :  { %1469 = vmatmul.msk.bf16.vlgmr.msrb.gmra.mxu0 %vm1020_vm10, %v2280_v27  ;;  %1470 = vmatmul.msk.bf16.vlgmr.msrb.gmra.mxu1 %vm1020_vm10, %v2280_v27  ;;  %v805_v36 = vpack.c.bf16 %v801_v47, %v800_v31 }
 0x23f   :  { %1093 = vmatpush.bf16.msra.mxu0 %v858_v21  ;;  %1107 = vmatpush.bf16.msra.mxu1 %v859_v14  ;;  %v913_v14 = vpack.c.bf16 %v907_v6, %v906_v51  ;;  %v983_v51 = vunpack.c.h.b16 %v915_v4 }
 0x241   :  { %v745_v30 = vpop.permute.xlu0 %744  ;;  %v979_v25 = vunpack.c.h.b16 %v913_v14 }
 0x242   :  { %v931_v43 = vpop.permute.xlu1 %930  ;;  %v751_v45 = vsel %vm67_vm6, %v745_v30, %v2237_v17 }
 0x243   :  { %1094 = vmatpush.bf16.msra.mxu0 %v838_v46  ;;  %1108 = vmatpush.bf16.msra.mxu1 %v839_v16  ;;  %v933_v21 = vsel %vm223_vm1, %v2203_v57, %v931_v43  ;;  %v939_v49 = vsel %vm223_vm1, %v931_v43, %v2099_v63  ;;  %v753_v57 = vsel %vm67_vm6, %v2233_v59, %v745_v30  ;;  %v1231_v63 = vpop.permute.xlu2 %1230  ;;  %v982_v16 = vunpack.c.l.b16 %v915_v4 }
 0x244   :  { %v946_v7 = vmul.f32 %v933_v21, %v1648_v23  ;;  %v947_v35 = vmul.f32 %v939_v49, %v1646_v22  ;;  %v978_v22 = vunpack.c.l.b16 %v913_v14  ;;  %v764_v17 = vmul.f32 %v753_v57, %v1762_v37 }
 0x245   :  { %v765_v50 = vmul.f32 %v751_v45, %v1764_v38  ;;  %v856_v38 = vunpack.c.l.b16 %v805_v36  ;;  %v987_v42 = vpack.c.b16 %v983_v51, %v979_v25  ;;  %v857_v21 = vunpack.c.h.b16 %v805_v36  ;;  %v2559_v36 = vld [vmem:[#allocation15_spill] sm:$0xff] }
 0x246   :  { %v951_v58 = vpack.c.bf16 %v947_v35, %v946_v7  ;;  %v986_v37 = vpack.c.b16 %v982_v16, %v978_v22  ;;  %v853_v35 = vunpack.c.h.b16 %v2124_v52  ;;  %v1297_v16 = vunpack.c.h.b16 %v2120_v10 }
 0x247   :  { %v769_v49 = vpack.c.bf16 %v765_v50, %v764_v17  ;;  %v832_v51 = vunpack.c.l.b16 %v2153_v15  ;;  %v719_v17 = vsel %vm38_vm5, %v2178_v18, %v2227_v3 }
 0x248   :  { %v1002_v12 = vunpack.c.l.b16 %v951_v58  ;;  %v1003_v23 = vunpack.c.h.b16 %v951_v58  ;;  %v1296_v58 = vunpack.c.l.b16 %v2120_v10  ;;  %v861_v57 = vpack.c.b16 %v857_v21, %v853_v35 }
 0x249   :  { %v2320_v46 = vpop.permute.xlu0 %1156  ;;  %v837_v22 = vunpack.c.h.b16 %v769_v49 }
 0x24a   :  { %v879_v53 = vpop.permute.xlu1 %878  ;;  %v1006_v40 = vpack.c.b16 %v1002_v12, %v998_v24  ;;  %v1007_v0 = vpack.c.b16 %v1003_v23, %v999_v26  ;;  %v2558_v24 = vld [vmem:[#allocation14_spill] sm:$0xff] }
 0x24b   :  { %v885_v59 = vsel %vm176_vm0, %v879_v53, %v2257_v28  ;;  %v887_v30 = vsel %vm176_vm0, %v2130_v61, %v879_v53  ;;  %v959_v28 = vunpack.c.h.b16 %v2169_v11  ;;  %v1195_v47 = vpop.permute.xlu2 %1194  ;;  %v836_v11 = vunpack.c.l.b16 %v769_v49 }
 0x24c   :  { %v898_v33 = vmul.f32 %v887_v30, %v1642_v20  ;;  %v899_v6 = vmul.f32 %v885_v59, %v1640_v19  ;;  %1057 = vmatpush.bf16.msrb.mxu2 %v1006_v40  ;;  %1071 = vmatpush.bf16.msrb.mxu3 %v1007_v0  ;;  %v852_v19 = vunpack.c.l.b16 %v2124_v52  ;;  %v1196_v26 = vsel %vm485_vm9, %v2558_v24, %v2215_v32  ;;  %v2560_v0 = vld [vmem:[#allocation7_spill] sm:$0xff] }
 0x24d   :  { %v1202_v53 = vsel %vm485_vm9, %v2215_v32, %v2559_v36  ;;  %v1198_v50 = vsel %vm485_vm9, %v2286_v55, %v2558_v24  ;;  %v1239_v59 = vsel %vm515_vm7, %v1231_v63, %v2264_v29  ;;  %v833_v32 = vunpack.c.h.b16 %v2153_v15 }
 0x24e   :  { %v903_v43 = vpack.c.bf16 %v899_v6, %v898_v33  ;;  %v860_v45 = vpack.c.b16 %v856_v38, %v852_v19  ;;  %v1200_v30 = vsel %vm485_vm9, %v2559_v36, %v2286_v55  ;;  %v1206_v25 = vmul.f32 %v1196_v26, %v2560_v0  ;;  %v2561_v55 = vld [vmem:[#allocation6_spill] sm:$0xff] }
 0x24f   :  { %v840_v15 = vpack.c.b16 %v836_v11, %v832_v51  ;;  %v811_v49 = vunpack.c.h.b16 %v2197_v62 }
 0x250   :  { %v962_v61 = vunpack.c.l.b16 %v903_v43  ;;  %v963_v7 = vunpack.c.h.b16 %v903_v43  ;;  %1058 = vmatpush.bf16.msrb.mxu2 %v986_v37  ;;  %1072 = vmatpush.bf16.msrb.mxu3 %v987_v42  ;;  %v810_v43 = vunpack.c.l.b16 %v2197_v62  ;;  %v1207_v37 = vmul.f32 %v1202_v53, %v2561_v55  ;;  %v2562_v42 = vld [vmem:[#allocation8_spill] sm:$0xff] }
 0x251   :  { %v1227_v20 = vpop.permute.xlu0 %1226 }
 0x252   :  { %v1223_v14 = vpop.permute.xlu1 %1222  ;;  %v966_v4 = vpack.c.b16 %v962_v61, %v958_v5  ;;  %v967_v31 = vpack.c.b16 %v963_v7, %v959_v28  ;;  %v1233_v12 = vsel %vm515_vm7, %v1227_v20, %v1231_v63  ;;  %v1204_v5 = vmul.f32 %v1200_v30, %v2562_v42 }
 0x253   :  { %v1235_v23 = vsel %vm515_vm7, %v1223_v14, %v1227_v20  ;;  %v1237_v52 = vsel %vm515_vm7, %v2264_v29, %v1223_v14  ;;  %v1246_v33 = vmul.f32 %v1233_v12, %v1812_v44  ;;  %v841_v29 = vpack.c.b16 %v837_v22, %v833_v32  ;;  %v2403_v19 = vpop.permute.xlu2 %1154  ;;  %v2564_v14 = vld [vmem:[#allocation17_spill] sm:$0xff] }
 0x254   :  { %1059 = vmatpush.bf16.msrb.mxu2 %v966_v4  ;;  %1073 = vmatpush.bf16.msrb.mxu3 %v967_v31  ;;  %v1244_v6 = vmul.f32 %v1237_v52, %v1808_v39  ;;  %v1245_v40 = vmul.f32 %v1235_v23, %v1810_v41  ;;  %v727_v44 = vmul.f32 %v719_v17, %v1779_v56  ;;  %v1298_v4 = vunpack.c.l.b16 %v2564_v14  ;;  %v2565_v31 = vld [vmem:[#allocation16_spill] sm:$0xff] }
 0x255   :  { %v717_v39 = vsel %vm38_vm5, %v2227_v3, %v2269_v48  ;;  %v1247_v41 = vmul.f32 %v1239_v59, %v1806_v34  ;;  %v1203_v20 = vsel %vm485_vm9, %v1195_v47, %v2275_v54 }
 0x256   :  { %v1250_v61 = vpack.c.bf16 %v1245_v40, %v1244_v6  ;;  %v728_v7 = vmul.f32 %v717_v39, %v1738_v2  ;;  %v1299_v2 = vunpack.c.h.b16 %v2564_v14 }
 0x257   :  { %1471 = vmatmul.msk.bf16.vlgmr.msrb.gmra.mxu2 %vm1020_vm10, %v2280_v27  ;;  %1472 = vmatmul.msk.bf16.vlgmr.msrb.gmra.mxu3 %vm1020_vm10, %v2280_v27  ;;  %v2563_v27 = vld [vmem:[#allocation9_spill] sm:$0xff]  ;;  %v1251_v56 = vpack.c.bf16 %v1247_v41, %v1246_v33 }
 0x258   :  { %1121 = vmatpush.bf16.msra.mxu2 %v860_v45  ;;  %1135 = vmatpush.bf16.msra.mxu3 %v861_v57  ;;  %v1205_v28 = vmul.f32 %v1198_v50, %v2563_v27  ;;  %v812_v45 = vunpack.c.l.b16 %v2565_v31  ;;  %v2412_v57 = vpack.c.bf16 %v1207_v37, %v1206_v25  ;;  %v1300_v52 = vunpack.c.l.b16 %v1250_v61  ;;  %v1494_v37 = vld [vmem:[%s2510_s4] sm:$0xff] }
 0x259   :  { %v1191_v63 = vpop.permute.xlu0 %1190  ;;  %v1302_v23 = vunpack.c.l.b16 %v1251_v56  ;;  %v1301_v51 = vunpack.c.h.b16 %v1250_v61  ;;  %v1303_v30 = vunpack.c.h.b16 %v1251_v56  ;;  %v2567_v56 = vld [vmem:[#allocation4_spill] sm:$0xff] }
 0x25a   :  { %v713_v38 = vpop.permute.xlu1 %712  ;;  %v1197_v21 = vsel %vm485_vm9, %v1191_v63, %v1195_v47  ;;  %v1212_v12 = vpack.c.bf16 %v1205_v28, %v1204_v5  ;;  %v1279_v10 = vunpack.c.h.b16 %v2412_v57 }
 0x25b   :  { %v715_v3 = vsel %vm38_vm5, %v2269_v48, %v713_v38  ;;  %v721_v34 = vsel %vm38_vm5, %v713_v38, %v2178_v18  ;;  %v1210_v48 = vmul.f32 %v1197_v21, %v2560_v0  ;;  %v813_v18 = vunpack.c.h.b16 %v2565_v31  ;;  %v2566_v21 = vld [vmem:[#allocation5_spill] sm:$0xff] }
 0x25c   :  { %1122 = vmatpush.bf16.msra.mxu2 %v840_v15  ;;  %1136 = vmatpush.bf16.msra.mxu3 %v841_v29  ;;  %v726_v62 = vmul.f32 %v721_v34, %v1781_v60  ;;  %v729_v35 = vmul.f32 %v715_v3, %v1743_v9  ;;  %v1388_v60 = vld [vmem:[%s2509_s5 + $0x8] sm:$0xff]  ;;  %v1211_v9 = vmul.f32 %v1203_v20, %v2561_v55  ;;  %v1276_v29 = vunpack.c.l.b16 %v1212_v12 }
 0x25d   :  { %1396 = vperm.xlu1 %1508, %v1388_v60   ;;  %v1305_v39 = vpack.c.b16 %v1301_v51, %v1297_v16  ;;  %v1306_v41 = vpack.c.b16 %v1302_v23, %v1298_v4 }
 0x25e   :  { %v732_v11 = vpack.c.bf16 %v727_v44, %v726_v62  ;;  %v733_v47 = vpack.c.bf16 %v729_v35, %v728_v7  ;;  %v1215_v17 = vpack.c.bf16 %v1211_v9, %v1210_v48  ;;  %v1277_v44 = vunpack.c.h.b16 %v1212_v12 }
 0x260   :  { %v814_v24 = vunpack.c.l.b16 %v732_v11  ;;  %v815_v26 = vunpack.c.h.b16 %v732_v11  ;;  %v816_v36 = vunpack.c.l.b16 %v733_v47  ;;  %v817_v53 = vunpack.c.h.b16 %v733_v47  ;;  %v2569_v11 = vld [vmem:[#allocation11_spill] sm:$0xff] }
 0x261   :  { %v1187_v22 = vpop.permute.xlu0 %1186  ;;  %v1282_v38 = vunpack.c.l.b16 %v1215_v17  ;;  %v1283_v5 = vunpack.c.h.b16 %v1215_v17  ;;  %v1496_v17 = vld [vmem:[%s2510_s4 + $0x10] sm:$0xff] }
 0x262   :  { %v1199_v50 = vsel %vm485_vm9, %v1187_v22, %v1191_v63  ;;  %v1201_v59 = vsel %vm485_vm9, %v2275_v54, %v1187_v22  ;;  %v2423_v32 = vpop.permute.xlu1 %1152  ;;  %v818_v40 = vpack.c.b16 %v814_v24, %v810_v43  ;;  %v819_v0 = vpack.c.b16 %v815_v26, %v811_v49 }
 0x263   :  { %v1208_v33 = vmul.f32 %v1201_v59, %v2562_v42  ;;  %v1209_v6 = vmul.f32 %v1199_v50, %v2563_v27  ;;  %v820_v25 = vpack.c.b16 %v816_v36, %v812_v45  ;;  %v821_v15 = vpack.c.b16 %v817_v53, %v813_v18  ;;  %v1151_v42 = vpop.permute.xlu2 %1150 }
 0x264   :  { %v1160_v63 = vsel %vm455_vm8, %v2423_v32, %v2320_v46  ;;  %1095 = vmatpush.bf16.msra.mxu0 %v818_v40  ;;  %v1304_v54 = vpack.c.b16 %v1300_v52, %v1296_v58  ;;  %v1166_v43 = vsel %vm455_vm8, %v2320_v46, %v2225_v8  ;;  %1109 = vmatpush.bf16.msra.mxu1 %v819_v0  ;;  %v1278_v46 = vunpack.c.l.b16 %v2412_v57 }
 0x265   :  { %v1214_v55 = vpack.c.bf16 %v1209_v6, %v1208_v33  ;;  %1123 = vmatpush.bf16.msra.mxu2 %v820_v25  ;;  %1137 = vmatpush.bf16.msra.mxu3 %v821_v15  ;;  %v1307_v58 = vpack.c.b16 %v1303_v30, %v1299_v2  ;;  %v1170_v49 = vmul.f32 %v1160_v63, %v2566_v21  ;;  %v2568_v2 = vld [vmem:[#allocation10_spill] sm:$0xff] }
 0x266   :  { %v1171_v61 = vmul.f32 %v1166_v43, %v2567_v56  ;;  %v1163_v34 = vsel %vm455_vm8, %v1151_v42, %v2403_v19  ;;  %v1165_v7 = vsel %vm455_vm8, %v2235_v1, %v1151_v42  ;;  %v1286_v20 = vpack.c.b16 %v1282_v38, %v1278_v46 }
 0x267   :  { %v1280_v27 = vunpack.c.l.b16 %v1214_v55  ;;  %v1281_v28 = vunpack.c.h.b16 %v1214_v55  ;;  %1477 = vmatmul.msk.bf16.vlgmr.msra.gmra.mxu0 %vm1020_vm10, %v1494_v37  ;;  %1478 = vmatmul.msk.bf16.vlgmr.msra.gmra.mxu1 %vm1020_vm10, %v1494_v37  ;;  %v1287_v35 = vpack.c.b16 %v1283_v5, %v1279_v10  ;;  %v1172_v57 = vmul.f32 %v1165_v7, %v2568_v2 }
 0x268   :  { %1328 = vmatpush.bf16.msrb.mxu0 %v1304_v54  ;;  %1342 = vmatpush.bf16.msrb.mxu1 %v1305_v39  ;;  %v1177_v48 = vpack.c.bf16 %v1171_v61, %v1170_v49  ;;  %v1173_v47 = vmul.f32 %v1163_v34, %v2569_v11 }
 0x269   :  { %1356 = vmatpush.bf16.msrb.mxu2 %v1306_v41  ;;  %1370 = vmatpush.bf16.msrb.mxu3 %v1307_v58  ;;  %v1284_v16 = vpack.c.b16 %v1280_v27, %v1276_v29  ;;  %v1285_v3 = vpack.c.b16 %v1281_v28, %v1277_v44  ;;  %v1392_v61 = vpop.permute.xlu0 %1391 }
 0x26a   :  { %1479 = vmatmul.msk.bf16.vlgmr.msra.gmra.mxu2 %vm1020_vm10, %v1494_v37  ;;  %v1159_v62 = vpop.permute.xlu1 %1158  ;;  %1480 = vmatmul.msk.bf16.vlgmr.msra.gmra.mxu3 %vm1020_vm10, %v1494_v37  ;;  %v1258_v60 = vunpack.c.l.b16 %v1177_v48  ;;  %v1259_v12 = vunpack.c.h.b16 %v1177_v48  ;;  %v1178_v26 = vpack.c.bf16 %v1173_v47, %v1172_v57 }
 0x26b   :  { %v1161_v14 = vsel %vm455_vm8, %v2403_v19, %v1159_v62  ;;  %v1167_v4 = vsel %vm455_vm8, %v1159_v62, %v2235_v1 }
 0x26c   :  { %1329 = vmatpush.bf16.msrb.mxu0 %v1284_v16  ;;  %v1174_v31 = vmul.f32 %v1161_v14, %v2566_v21  ;;  %v1175_v45 = vmul.f32 %v1167_v4, %v2567_v56  ;;  %1343 = vmatpush.bf16.msrb.mxu1 %v1285_v3  ;;  %v1260_v59 = vunpack.c.l.b16 %v1178_v26 }
 0x26d   :  { %1357 = vmatpush.bf16.msrb.mxu2 %v1286_v20  ;;  %1371 = vmatpush.bf16.msrb.mxu3 %v1287_v35 }
 0x26e   :  { %v1179_v18 = vpack.c.bf16 %v1175_v45, %v1174_v31 }
 0x270   :  { %v1262_v19 = vunpack.c.l.b16 %v1179_v18  ;;  %v1263_v9 = vunpack.c.h.b16 %v1179_v18 }
 0x272   :  { %v1149_v23 = vpop.permute.xlu1 %1148  ;;  %v1266_v1 = vpack.c.b16 %v1262_v19, %v1258_v60  ;;  %v1267_v52 = vpack.c.b16 %v1263_v9, %v1259_v12 }
 0x273   :  { %v1162_v22 = vsel %vm455_vm8, %v1149_v23, %v2423_v32  ;;  %v1164_v24 = vsel %vm455_vm8, %v2225_v8, %v1149_v23  ;;  %v1261_v32 = vunpack.c.h.b16 %v1178_v26 }
 0x274   :  { %v1168_v36 = vmul.f32 %v1164_v24, %v2568_v2  ;;  %v1169_v53 = vmul.f32 %v1162_v22, %v2569_v11  ;;  %1358 = vmatpush.bf16.msrb.mxu2 %v1266_v1  ;;  %1372 = vmatpush.bf16.msrb.mxu3 %v1267_v52 }
 0x276   :  { %v1176_v51 = vpack.c.bf16 %v1169_v53, %v1168_v36 }
 0x278   :  { %v1256_v50 = vunpack.c.l.b16 %v1176_v51  ;;  %v1257_v30 = vunpack.c.h.b16 %v1176_v51 }
 0x27a   :  { %1489 = vmatmul.msk.bf16.vlgmr.msrb.gmra.mxu2 %vm1020_vm10, %v1496_v17  ;;  %v1264_v13 = vpack.c.b16 %v1260_v59, %v1256_v50  ;;  %v1265_v8 = vpack.c.b16 %v1261_v32, %v1257_v30  ;;  %1490 = vmatmul.msk.bf16.vlgmr.msrb.gmra.mxu3 %vm1020_vm10, %v1496_v17 }
 0x27c   :  { %1330 = vmatpush.bf16.msrb.mxu0 %v1264_v13  ;;  %1344 = vmatpush.bf16.msrb.mxu1 %v1265_v8 }
 0x27f   :  { %1487 = vmatmul.msk.bf16.vlgmr.msrb.gmra.mxu0 %vm1020_vm10, %v1496_v17  ;;  %1488 = vmatmul.msk.bf16.vlgmr.msrb.gmra.mxu1 %vm1020_vm10, %v1496_v17 }
 0x2bb   :  { %v1033_v33 = vpop.f32.mrf.mxu0  ;;  %v1047_v6 = vpop.f32.mrf.mxu1 }
 0x2c3   :  { %v1035_v25 = vpop.f32.mrf.mxu0  ;;  %v1049_v15 = vpop.f32.mrf.mxu1 }
 0x2cf   :  { %v1397_v60 = vpop.permute.xlu1 %1396 }
 0x2da   :  { %v1061_v40 = vpop.f32.mrf.mxu2  ;;  %v1075_v0 = vpop.f32.mrf.mxu3 }
 0x2e2   :  { %v1063_v29 = vpop.f32.mrf.mxu2  ;;  %v1077_v55 = vpop.f32.mrf.mxu3 }
 0x2e4   :  { %v1097_v63 = vpop.f32.mrf.mxu0  ;;  %v1111_v54 = vpop.f32.mrf.mxu1 }
 0x2e5   :  { %v1098_v42 = vadd.f32 %v1097_v63, %v1033_v33  ;;  %v1112_v58 = vadd.f32 %v1111_v54, %v1047_v6 }
 0x2ec   :  { %v1099_v43 = vpop.f32.mrf.mxu0  ;;  %v1113_v39 = vpop.f32.mrf.mxu1 }
 0x2ed   :  { %v1125_v37 = vpop.f32.mrf.mxu2  ;;  %v1139_v44 = vpop.f32.mrf.mxu3  ;;  %v1100_v48 = vadd.f32 %v1099_v43, %v1035_v25  ;;  %v1114_v31 = vadd.f32 %v1113_v39, %v1049_v15 }
 0x2ee   :  { %v1126_v5 = vadd.f32 %v1125_v37, %v1061_v40  ;;  %v1140_v21 = vadd.f32 %v1139_v44, %v1075_v0 }
 0x2f5   :  { %v1127_v41 = vpop.f32.mrf.mxu2  ;;  %v1141_v38 = vpop.f32.mrf.mxu3 }
 0x2f6   :  { %v1128_v18 = vadd.f32 %v1127_v41, %v1063_v29  ;;  %v1142_v11 = vadd.f32 %v1141_v38, %v1077_v55 }
 0x2fc   :  { %v1332_v27 = vpop.f32.mrf.mxu0  ;;  %v1346_v28 = vpop.f32.mrf.mxu1 }
 0x2fd   :  { %v1360_v49 = vpop.f32.mrf.mxu2  ;;  %v1379_v46 = vadd.f32 %v1332_v27, %v1098_v42  ;;  %v1380_v56 = vadd.f32 %v1346_v28, %v1112_v58  ;;  %v1374_v16 = vpop.f32.mrf.mxu3 }
 0x2fe   :  { %v1381_v10 = vadd.f32 %v1360_v49, %v1126_v5  ;;  %v1382_v3 = vadd.f32 %v1374_v16, %v1140_v21 }
 0x2ff   :  { %v1399_v34 = vadd.f32 %v1392_v61, %v1379_v46  ;;  %v1400_v7 = vadd.f32 %v1392_v61, %v1380_v56 }
 0x300   :  { %v1401_v20 = vadd.f32 %v1392_v61, %v1381_v10  ;;  %v1402_v62 = vadd.f32 %v1392_v61, %v1382_v3 }
 0x301   :  { %v1407_v35 = vmax.f32 %v1399_v34, 0.0  ;;  %v1408_v4 = vmax.f32 %v1400_v7, 0.0 }
 0x302   :  { %v1409_v14 = vmax.f32 %v1401_v20, 0.0  ;;  %v1410_v45 = vmax.f32 %v1402_v62, 0.0 }
 0x303   :  { %1415 = vst [vmem:[%s2511_s6] sm:$0xff] %v1407_v35 }
 0x304   :  { %1417 = vst [vmem:[%s2511_s6 + $0x10] sm:$0xff] %v1409_v14  ;;  %v1334_v2 = vpop.f32.mrf.mxu0  ;;  %v1348_v57 = vpop.f32.mrf.mxu1 }
 0x305   :  { %1418 = vst [vmem:[%s2511_s6 + $0x18] sm:$0xff] %v1410_v45  ;;  %v1362_v47 = vpop.f32.mrf.mxu2  ;;  %v1383_v19 = vadd.f32 %v1334_v2, %v1100_v48  ;;  %v1384_v12 = vadd.f32 %v1348_v57, %v1114_v31  ;;  %v1376_v23 = vpop.f32.mrf.mxu3 }
 0x306   :  { %1416 = vst [vmem:[%s2511_s6 + $0x8] sm:$0xff] %v1408_v4  ;;  %v1385_v9 = vadd.f32 %v1362_v47, %v1128_v18  ;;  %v1386_v1 = vadd.f32 %v1376_v23, %v1142_v11 }
 0x307   :  { %v1403_v52 = vadd.f32 %v1397_v60, %v1383_v19  ;;  %v1404_v22 = vadd.f32 %v1397_v60, %v1384_v12 }
 0x308   :  { %v1405_v24 = vadd.f32 %v1397_v60, %v1385_v9  ;;  %v1406_v26 = vadd.f32 %v1397_v60, %v1386_v1 }
 0x309   :  { %v1411_v36 = vmax.f32 %v1403_v52, 0.0  ;;  %v1412_v51 = vmax.f32 %v1404_v22, 0.0 }
 0x30a   :  { %v1413_v53 = vmax.f32 %v1405_v24, 0.0  ;;  %v1414_v17 = vmax.f32 %v1406_v26, 0.0 }
 0x30b   :  { %1419 = vst [vmem:[%s2511_s6 + $0x20] sm:$0xff] %v1411_v36 }
 0x30c   :  { %1421 = vst [vmem:[%s2511_s6 + $0x30] sm:$0xff] %v1413_v53 }
 0x30d   :  { %1422 = vst [vmem:[%s2511_s6 + $0x38] sm:$0xff] %v1414_v17 }
 0x30e   :  { %1420 = vst [vmem:[%s2511_s6 + $0x28] sm:$0xff] %v1412_v51 }

</bundles_post_ra>
